<compile_context>
chip_gen: v7x
topology: tpu7x:2x2x1
jax: 0.10.0
libtpu: 0.0.40
codegen_flags: <defaults>
</compile_context>

<pallas_src>
import functools

import jax
import jax.numpy as jnp
from jax.experimental import pallas as pl
from jax.experimental.pallas import tpu as pltpu

# ---------------- configuration (small synthetic encoder) ----------------
BATCH = 2
CHANNELS = 4
IMAGE = 16
PATCH = 8
NUM_PATCHES = (IMAGE // PATCH) ** 2            # 4  (power of two -> shift trick)
PATCH_DIM = CHANNELS * PATCH * PATCH           # 256 (pixel_values_per_patch)
DIM = 32                                       # encoder_dim
DEPTH = 2
HEADS = 4
DIM_HEAD = 8
INNER = HEADS * DIM_HEAD                       # 32
MLP_DIM = 64
MASKING_RATIO = 0.5
NUM_MASKED = int(MASKING_RATIO * NUM_PATCHES)  # 2
LN_EPS = 1e-5


def _layernorm(x, g, b):
    mu = jnp.mean(x, axis=-1, keepdims=True)
    var = jnp.mean(jnp.square(x - mu), axis=-1, keepdims=True)
    return (x - mu) * jax.lax.rsqrt(var + LN_EPS) * g + b


# ---------------- fused kernel: whole SimMIM forward ----------------
def simmim_fused_kernel(patches_ref, maskf_ref, pos_ref, gvec_ref,
                        w_emb_ref, w_pix_ref, wqkv_ref, wout_ref,
                        w1_ref, w2_ref, lvec_ref, loss_ref,
                        *, depth, heads, dim_head, dim, batch,
                        num_tokens, num_masked):
    bn = batch * num_tokens
    inner = heads * dim_head

    patches = patches_ref[...]                     # (B*N, P)
    maskf = maskf_ref[...]                         # (B*N, 1) in {0, 1}
    pos = pos_ref[...]                             # (B*N, D)
    gv = gvec_ref[...]                             # (9, P) packed global vectors

    # Per-image additive attention bias built in-kernel (no operand DMA):
    # 0 within an image, -1e30 across images.  num_tokens is a power of two.
    assert num_tokens & (num_tokens - 1) == 0 and num_tokens > 0
    shift = num_tokens.bit_length() - 1
    row = jax.lax.broadcasted_iota(jnp.int32, (bn, bn), 0)
    col = jax.lax.broadcasted_iota(jnp.int32, (bn, bn), 1)
    attn_bias = jnp.where((row >> shift) == (col >> shift),
                          jnp.float32(0.0), jnp.float32(-1e30))

    # ---- patch embedding: LN -> Linear -> LN, + pos, mask-token merge ----
    x = _layernorm(patches, gv[0:1, :], gv[1:2, :])
    x = jnp.dot(x, w_emb_ref[...], preferred_element_type=jnp.float32) + gv[5:6, 0:dim]
    x = _layernorm(x, gv[3:4, 0:dim], gv[4:5, 0:dim])
    tokens = x + pos
    mask_tok = gv[6:7, 0:dim] + pos
    x = jnp.where(maskf > 0.5, mask_tok, tokens)   # (B*N, D)

    scale = dim_head ** -0.5
    for l in range(depth):                         # static unroll over layers
        lv = lvec_ref[l]                           # (7, MLP): aln_g, aln_b, fln_g, fln_b, b_out, b2, b1

        # ---- attention: single fused QKV matmul, heads split via lane slices ----
        xn = _layernorm(x, lv[0:1, 0:dim], lv[1:2, 0:dim])
        qkv = jnp.dot(xn, wqkv_ref[l], preferred_element_type=jnp.float32)  # (BN, 3*INNER)
        q = jnp.stack([qkv[:, h * dim_head:(h + 1) * dim_head]
                       for h in range(heads)], 0)                           # (H, BN, dh)
        k = jnp.stack([qkv[:, inner + h * dim_head:inner + (h + 1) * dim_head]
                       for h in range(heads)], 0)
        v = jnp.stack([qkv[:, 2 * inner + h * dim_head:2 * inner + (h + 1) * dim_head]
                       for h in range(heads)], 0)
        dots = jnp.einsum('hnd,hmd->hnm', q, k,
                          preferred_element_type=jnp.float32) * scale + attn_bias
        # KEEP the max-subtraction: diagonal bias is 0, so this neutralizes -1e30.
        dots = dots - jnp.max(dots, axis=-1, keepdims=True)
        e = jnp.exp(dots)
        attn = e * pl.reciprocal(jnp.sum(e, axis=-1, keepdims=True), approx=True)
        out = jnp.einsum('hnm,hmd->hnd', attn, v,
                         preferred_element_type=jnp.float32)                # (H, BN, dh)
        merged = jnp.concatenate([out[h] for h in range(heads)], axis=-1)   # (BN, INNER)
        x = x + jnp.dot(merged, wout_ref[l],
                        preferred_element_type=jnp.float32) + lv[4:5, 0:dim]

        # ---- feed-forward (tanh GELU -> EUP slot) ----
        xn = _layernorm(x, lv[2:3, 0:dim], lv[3:4, 0:dim])
        h1 = jnp.dot(xn, w1_ref[l], preferred_element_type=jnp.float32) + lv[6:7, :]
        h1 = jax.nn.gelu(h1, approximate=True)
        x = x + jnp.dot(h1, w2_ref[l], preferred_element_type=jnp.float32) + lv[5:6, 0:dim]

    # ---- final LN + to_pixels on ALL tokens, mask-weighted L1 ----
    xf = _layernorm(x, gv[7:8, 0:dim], gv[8:9, 0:dim])
    pred = jnp.dot(xf, w_pix_ref[...], preferred_element_type=jnp.float32) + gv[2:3, :]
    diff = jnp.abs(pred - patches) * maskf         # only masked tokens contribute
    # Reference loss: mean over the (B, M, P) masked entries, then / M
    #   => sum(|.| over masked) / (B * M * P) / M.  The mask-weighted sum over
    #   all tokens equals the gather-based sum over masked tokens exactly.
    denom = float(batch * num_masked * pred.shape[-1] * num_masked)
    loss_ref[0, 0] = jnp.sum(diff) / denom


# ---------------- one-time (eager, outside jit) weight packing ----------------
def pack_params(params):
    """Pack per-layer weights into stacked slabs ONCE at init time."""
    def pad_lanes(v, width):                       # (1, d) -> (1, width), zero pad
        return jnp.pad(v, ((0, 0), (0, width - v.shape[-1])))

    w_qkv = jnp.stack([lp["w_qkv"] for lp in params["layers"]])        # (L, D, 3*INNER)
    w_out = jnp.stack([lp["w_out"] for lp in params["layers"]])        # (L, INNER, D)
    w1 = jnp.stack([lp["w1"] for lp in params["layers"]])              # (L, D, MLP)
    w2 = jnp.stack([lp["w2"] for lp in params["layers"]])              # (L, MLP, D)
    lvec = jnp.stack([jnp.concatenate(
        [pad_lanes(lp["aln_g"], MLP_DIM), pad_lanes(lp["aln_b"], MLP_DIM),
         pad_lanes(lp["fln_g"], MLP_DIM), pad_lanes(lp["fln_b"], MLP_DIM),
         pad_lanes(lp["b_out"], MLP_DIM), pad_lanes(lp["b2"], MLP_DIM),
         lp["b1"]], axis=0) for lp in params["layers"]])               # (L, 7, MLP)

    gvec = jnp.concatenate(
        [params["ln1_g"], params["ln1_b"], params["b_pix"],
         pad_lanes(params["ln2_g"], PATCH_DIM), pad_lanes(params["ln2_b"], PATCH_DIM),
         pad_lanes(params["b_emb"], PATCH_DIM), pad_lanes(params["mask_token"], PATCH_DIM),
         pad_lanes(params["final_ln_g"], PATCH_DIM),
         pad_lanes(params["final_ln_b"], PATCH_DIM)], axis=0)          # (9, P)

    pos = params["pos_embedding"][0, 1:NUM_PATCHES + 1]                # (N, D)
    pos_bn = jnp.broadcast_to(pos[None], (BATCH, NUM_PATCHES, DIM)
                              ).reshape(BATCH * NUM_PATCHES, DIM)      # (B*N, D)
    return {"gvec": gvec, "lvec": lvec, "pos_bn": pos_bn,
            "w_emb": params["w_emb"], "w_pix": params["w_pix"],
            "w_qkv": w_qkv, "w_out": w_out, "w1": w1, "w2": w2}


@jax.jit
def simmim_forward(img, packed, mask_rand):
    B, C, H, W = img.shape
    hh, ww = H // PATCH, W // PATCH
    # Rearrange 'b c (h p1) (w p2) -> b (h w) (p1 p2 c)'  (data-dependent glue)
    patches = img.reshape(B, C, hh, PATCH, ww, PATCH)
    patches = patches.transpose(0, 2, 4, 3, 5, 1).reshape(B, hh * ww, PATCH * PATCH * C)
    N, P = patches.shape[1], patches.shape[2]
    BN = B * N

    # random masking: torch.rand(...).topk(...).indices + scatter  (glue)
    _, masked_indices = jax.lax.top_k(mask_rand, NUM_MASKED)           # (B, M)
    bool_mask = jnp.zeros((B, N), jnp.float32).at[
        jnp.arange(B)[:, None], masked_indices].set(1.0)
    maskf = bool_mask.reshape(BN, 1)
    patches2 = patches.reshape(BN, P)

    loss = pl.pallas_call(
        functools.partial(simmim_fused_kernel, depth=DEPTH, heads=HEADS,
                          dim_head=DIM_HEAD, dim=DIM, batch=B, num_tokens=N,
                          num_masked=NUM_MASKED),
        out_shape=jax.ShapeDtypeStruct((1, 1), jnp.float32),
        out_specs=pl.BlockSpec(memory_space=pltpu.MemorySpace.SMEM),
    )(patches2, maskf, packed["pos_bn"], packed["gvec"],
      packed["w_emb"], packed["w_pix"], packed["w_qkv"], packed["w_out"],
      packed["w1"], packed["w2"], packed["lvec"])
    return loss[0, 0]


# ---------------- deterministic parameter init ----------------
def init_params(key):
    ks = jax.random.split(key, 4 + DEPTH)

    def normal(k, shape, std=0.02):
        return std * jax.random.normal(k, shape, jnp.float32)

    params = {
        "pos_embedding": jax.random.normal(ks[0], (1, NUM_PATCHES + 1, DIM), jnp.float32),
        "mask_token": jax.random.normal(ks[1], (1, DIM), jnp.float32),
        "ln1_g": jnp.ones((1, PATCH_DIM), jnp.float32),
        "ln1_b": jnp.zeros((1, PATCH_DIM), jnp.float32),
        "w_emb": normal(ks[2], (PATCH_DIM, DIM)),
        "b_emb": jnp.zeros((1, DIM), jnp.float32),
        "ln2_g": jnp.ones((1, DIM), jnp.float32),
        "ln2_b": jnp.zeros((1, DIM), jnp.float32),
        "final_ln_g": jnp.ones((1, DIM), jnp.float32),
        "final_ln_b": jnp.zeros((1, DIM), jnp.float32),
        "w_pix": normal(ks[3], (DIM, PATCH_DIM)),
        "b_pix": jnp.zeros((1, PATCH_DIM), jnp.float32),
        "layers": [],
    }
    for d in range(DEPTH):
        lk = jax.random.split(ks[4 + d], 4)
        params["layers"].append({
            "aln_g": jnp.ones((1, DIM), jnp.float32),
            "aln_b": jnp.zeros((1, DIM), jnp.float32),
            "w_qkv": normal(lk[0], (DIM, 3 * INNER)),
            "w_out": normal(lk[1], (INNER, DIM)),
            "b_out": jnp.zeros((1, DIM), jnp.float32),
            "fln_g": jnp.ones((1, DIM), jnp.float32),
            "fln_b": jnp.zeros((1, DIM), jnp.float32),
            "w1": normal(lk[2], (DIM, MLP_DIM)),
            "b1": jnp.zeros((1, MLP_DIM), jnp.float32),
            "w2": normal(lk[3], (MLP_DIM, DIM)),
            "b2": jnp.zeros((1, DIM), jnp.float32),
        })
    return params


# ---------------- pure-JAX reference (mirrors the PyTorch forward) ----------------
def simmim_reference(img, params, mask_rand):
    B, C, H, W = img.shape
    hh, ww = H // PATCH, W // PATCH
    patches = img.reshape(B, C, hh, PATCH, ww, PATCH)
    patches = patches.transpose(0, 2, 4, 3, 5, 1).reshape(B, hh * ww, PATCH * PATCH * C)
    N = patches.shape[1]
    _, masked_indices = jax.lax.top_k(mask_rand, NUM_MASKED)
    bool_mask = jnp.zeros((B, N), bool).at[
        jnp.arange(B)[:, None], masked_indices].set(True)
    pos = params["pos_embedding"][0, 1:N + 1]
    x = _layernorm(patches, params["ln1_g"], params["ln1_b"])
    x = x @ params["w_emb"] + params["b_emb"]
    x = _layernorm(x, params["ln2_g"], params["ln2_b"])
    tokens = x + pos
    mask_tokens = params["mask_token"] + pos
    tokens = jnp.where(bool_mask[..., None], mask_tokens, tokens)
    x = tokens
    for lp in params["layers"]:
        xn = _layernorm(x, lp["aln_g"], lp["aln_b"])
        qkv = xn @ lp["w_qkv"]
        q, k, v = jnp.split(qkv, 3, axis=-1)
        q = q.reshape(B, N, HEADS, DIM_HEAD).transpose(0, 2, 1, 3)
        k = k.reshape(B, N, HEADS, DIM_HEAD).transpose(0, 2, 1, 3)
        v = v.reshape(B, N, HEADS, DIM_HEAD).transpose(0, 2, 1, 3)
        dots = jnp.einsum('bhid,bhjd->bhij', q, k) * DIM_HEAD ** -0.5
        attn = jax.nn.softmax(dots, axis=-1)
        out = jnp.einsum('bhij,bhjd->bhid', attn, v)
        out = out.transpose(0, 2, 1, 3).reshape(B, N, INNER)
        x = x + out @ lp["w_out"] + lp["b_out"]
        xn = _layernorm(x, lp["fln_g"], lp["fln_b"])
        hdn = jax.nn.gelu(xn @ lp["w1"] + lp["b1"], approximate=False)
        x = x + hdn @ lp["w2"] + lp["b2"]
    x = _layernorm(x, params["final_ln_g"], params["final_ln_b"])
    enc_masked = jnp.take_along_axis(x, masked_indices[..., None], axis=1)
    pred = enc_masked @ params["w_pix"] + params["b_pix"]
    masked_patches = jnp.take_along_axis(patches, masked_indices[..., None], axis=1)
    return jnp.mean(jnp.abs(pred - masked_patches)) / NUM_MASKED


if __name__ == "__main__":
    key = jax.random.PRNGKey(0)
    k_img, k_params, k_mask = jax.random.split(key, 3)
    img = jax.random.normal(k_img, (BATCH, CHANNELS, IMAGE, IMAGE), jnp.float32)
    params = init_params(k_params)
    packed = pack_params(params)        # runs ONCE, eagerly, outside the jit
    mask_rand = jax.random.uniform(k_mask, (BATCH, NUM_PATCHES), jnp.float32)

    loss = jax.block_until_ready(simmim_forward(img, packed, mask_rand))
    ref = jax.block_until_ready(simmim_reference(img, params, mask_rand))

    assert jnp.isfinite(loss), loss
    assert jnp.allclose(loss, ref, rtol=1e-2, atol=1e-3), (loss, ref)
    print("KERNEL_OK")
</pallas_src>

<mosaic_0001>
module attributes {stable_mosaic.version = 11 : i64} {
  func.func @simmim_fused_kernel(%arg0: memref<8x256xf32, #tpu.memory_space<vmem>>, %arg1: memref<8x1xf32, #tpu.memory_space<vmem>>, %arg2: memref<8x32xf32, #tpu.memory_space<vmem>>, %arg3: memref<9x256xf32, #tpu.memory_space<vmem>>, %arg4: memref<256x32xf32, #tpu.memory_space<vmem>>, %arg5: memref<32x256xf32, #tpu.memory_space<vmem>>, %arg6: memref<2x32x96xf32, #tpu.memory_space<vmem>>, %arg7: memref<2x32x32xf32, #tpu.memory_space<vmem>>, %arg8: memref<2x32x64xf32, #tpu.memory_space<vmem>>, %arg9: memref<2x64x32xf32, #tpu.memory_space<vmem>>, %arg10: memref<2x7x64xf32, #tpu.memory_space<vmem>>, %arg11: memref<1x1xf32, #tpu.memory_space<smem>>) attributes {dimension_semantics = [], scalar_prefetch = 0 : i64, scratch_operands = 0 : i64, tpu.core_type = #tpu.core_type<tc>} {
    %c0 = arith.constant 0 : index
    %c0_0 = arith.constant 0 : index
    %0 = vector.load %arg0[%c0, %c0_0] : memref<8x256xf32, #tpu.memory_space<vmem>>, vector<8x256xf32>
    %c0_1 = arith.constant 0 : index
    %c0_2 = arith.constant 0 : index
    %1 = vector.load %arg1[%c0_1, %c0_2] : memref<8x1xf32, #tpu.memory_space<vmem>>, vector<8x1xf32>
    %c0_3 = arith.constant 0 : index
    %c0_4 = arith.constant 0 : index
    %2 = vector.load %arg2[%c0_3, %c0_4] : memref<8x32xf32, #tpu.memory_space<vmem>>, vector<8x32xf32>
    %c0_5 = arith.constant 0 : index
    %c0_6 = arith.constant 0 : index
    %3 = vector.load %arg3[%c0_5, %c0_6] : memref<9x256xf32, #tpu.memory_space<vmem>>, vector<9x256xf32>
    %4 = tpu.iota {dimensions = array<i32: 0>} : vector<8x8xi32>
    %5 = tpu.iota {dimensions = array<i32: 1>} : vector<8x8xi32>
    %c2_i32 = arith.constant 2 : i32
    %6 = vector.broadcast %c2_i32 : i32 to vector<8x8xi32>
    %7 = arith.shrsi %4, %6 : vector<8x8xi32>
    %c2_i32_7 = arith.constant 2 : i32
    %8 = vector.broadcast %c2_i32_7 : i32 to vector<8x8xi32>
    %9 = arith.shrsi %5, %8 : vector<8x8xi32>
    %10 = arith.cmpi eq, %7, %9 : vector<8x8xi32>
    %cst = arith.constant 0.000000e+00 : f32
    %cst_8 = arith.constant -1.000000e+30 : f32
    %11 = vector.broadcast %cst : f32 to vector<8x8xf32>
    %12 = vector.broadcast %cst_8 : f32 to vector<8x8xf32>
    %13 = arith.select %10, %11, %12 : vector<8x8xi1>, vector<8x8xf32>
    %14 = vector.extract_strided_slice %3 {offsets = [0, 0], sizes = [1, 256], strides = [1, 1]} : vector<9x256xf32> to vector<1x256xf32>
    %15 = vector.extract_strided_slice %3 {offsets = [1, 0], sizes = [1, 256], strides = [1, 1]} : vector<9x256xf32> to vector<1x256xf32>
    %cst_9 = arith.constant dense<0.000000e+00> : vector<8xf32>
    %16 = vector.multi_reduction <add>, %0, %cst_9 [1] : vector<8x256xf32> to vector<8xf32>
    %17 = vector.shape_cast %16 : vector<8xf32> to vector<8x1xf32>
    %cst_10 = arith.constant 2.560000e+02 : f32
    %18 = vector.broadcast %cst_10 : f32 to vector<8x1xf32>
    %19 = arith.divf %17, %18 : vector<8x1xf32>
    %20 = vector.broadcast %19 : vector<8x1xf32> to vector<8x256xf32>
    %21 = arith.subf %0, %20 : vector<8x256xf32>
    %22 = arith.mulf %21, %21 : vector<8x256xf32>
    %cst_11 = arith.constant dense<0.000000e+00> : vector<8xf32>
    %23 = vector.multi_reduction <add>, %22, %cst_11 [1] : vector<8x256xf32> to vector<8xf32>
    %24 = vector.shape_cast %23 : vector<8xf32> to vector<8x1xf32>
    %cst_12 = arith.constant 2.560000e+02 : f32
    %25 = vector.broadcast %cst_12 : f32 to vector<8x1xf32>
    %26 = arith.divf %24, %25 : vector<8x1xf32>
    %27 = vector.broadcast %19 : vector<8x1xf32> to vector<8x256xf32>
    %28 = arith.subf %0, %27 : vector<8x256xf32>
    %cst_13 = arith.constant 9.99999974E-6 : f32
    %29 = vector.broadcast %cst_13 : f32 to vector<8x1xf32>
    %30 = arith.addf %26, %29 : vector<8x1xf32>
    %31 = math.rsqrt %30 : vector<8x1xf32>
    %32 = vector.broadcast %31 : vector<8x1xf32> to vector<8x256xf32>
    %33 = arith.mulf %28, %32 : vector<8x256xf32>
    %34 = vector.broadcast %14 : vector<1x256xf32> to vector<8x256xf32>
    %35 = arith.mulf %33, %34 : vector<8x256xf32>
    %36 = vector.broadcast %15 : vector<1x256xf32> to vector<8x256xf32>
    %37 = arith.addf %35, %36 : vector<8x256xf32>
    %c0_14 = arith.constant 0 : index
    %c0_15 = arith.constant 0 : index
    %38 = vector.load %arg4[%c0_14, %c0_15] : memref<256x32xf32, #tpu.memory_space<vmem>>, vector<256x32xf32>
    %cst_16 = arith.constant dense<0.000000e+00> : vector<8x32xf32>
    %39 = tpu.matmul %37, %38, %cst_16 {dimension_numbers = #tpu.dot_dimension_numbers<[1], [0], [0], [1], [0, 0, 1, 1], [], []>} : vector<8x256xf32>, vector<256x32xf32>, vector<8x32xf32> -> vector<8x32xf32>
    %40 = vector.extract_strided_slice %3 {offsets = [5, 0], sizes = [1, 32], strides = [1, 1]} : vector<9x256xf32> to vector<1x32xf32>
    %41 = vector.broadcast %40 : vector<1x32xf32> to vector<8x32xf32>
    %42 = arith.addf %39, %41 : vector<8x32xf32>
    %43 = vector.extract_strided_slice %3 {offsets = [3, 0], sizes = [1, 32], strides = [1, 1]} : vector<9x256xf32> to vector<1x32xf32>
    %44 = vector.extract_strided_slice %3 {offsets = [4, 0], sizes = [1, 32], strides = [1, 1]} : vector<9x256xf32> to vector<1x32xf32>
    %cst_17 = arith.constant dense<0.000000e+00> : vector<8xf32>
    %45 = vector.multi_reduction <add>, %42, %cst_17 [1] : vector<8x32xf32> to vector<8xf32>
    %46 = vector.shape_cast %45 : vector<8xf32> to vector<8x1xf32>
    %cst_18 = arith.constant 3.200000e+01 : f32
    %47 = vector.broadcast %cst_18 : f32 to vector<8x1xf32>
    %48 = arith.divf %46, %47 : vector<8x1xf32>
    %49 = vector.broadcast %48 : vector<8x1xf32> to vector<8x32xf32>
    %50 = arith.subf %42, %49 : vector<8x32xf32>
    %51 = arith.mulf %50, %50 : vector<8x32xf32>
    %cst_19 = arith.constant dense<0.000000e+00> : vector<8xf32>
    %52 = vector.multi_reduction <add>, %51, %cst_19 [1] : vector<8x32xf32> to vector<8xf32>
    %53 = vector.shape_cast %52 : vector<8xf32> to vector<8x1xf32>
    %cst_20 = arith.constant 3.200000e+01 : f32
    %54 = vector.broadcast %cst_20 : f32 to vector<8x1xf32>
    %55 = arith.divf %53, %54 : vector<8x1xf32>
    %56 = vector.broadcast %48 : vector<8x1xf32> to vector<8x32xf32>
    %57 = arith.subf %42, %56 : vector<8x32xf32>
    %cst_21 = arith.constant 9.99999974E-6 : f32
    %58 = vector.broadcast %cst_21 : f32 to vector<8x1xf32>
    %59 = arith.addf %55, %58 : vector<8x1xf32>
    %60 = math.rsqrt %59 : vector<8x1xf32>
    %61 = vector.broadcast %60 : vector<8x1xf32> to vector<8x32xf32>
    %62 = arith.mulf %57, %61 : vector<8x32xf32>
    %63 = vector.broadcast %43 : vector<1x32xf32> to vector<8x32xf32>
    %64 = arith.mulf %62, %63 : vector<8x32xf32>
    %65 = vector.broadcast %44 : vector<1x32xf32> to vector<8x32xf32>
    %66 = arith.addf %64, %65 : vector<8x32xf32>
    %67 = arith.addf %66, %2 : vector<8x32xf32>
    %68 = vector.extract_strided_slice %3 {offsets = [6, 0], sizes = [1, 32], strides = [1, 1]} : vector<9x256xf32> to vector<1x32xf32>
    %69 = vector.broadcast %68 : vector<1x32xf32> to vector<8x32xf32>
    %70 = arith.addf %69, %2 : vector<8x32xf32>
    %cst_22 = arith.constant 5.000000e-01 : f32
    %71 = vector.broadcast %cst_22 : f32 to vector<8x1xf32>
    %72 = arith.cmpf ogt, %1, %71 : vector<8x1xf32>
    %73 = vector.shape_cast %72 : vector<8x1xi1> to vector<8x1xi1>
    %74 = vector.broadcast %73 : vector<8x1xi1> to vector<8x32xi1>
    %75 = arith.select %74, %70, %67 : vector<8x32xi1>, vector<8x32xf32>
    %c0_23 = arith.constant 0 : index
    %c0_24 = arith.constant 0 : index
    %c0_25 = arith.constant 0 : index
    %76 = vector.load %arg10[%c0_23, %c0_24, %c0_25] : memref<2x7x64xf32, #tpu.memory_space<vmem>>, vector<1x7x64xf32>
    %77 = vector.shape_cast %76 : vector<1x7x64xf32> to vector<7x64xf32>
    %78 = vector.extract_strided_slice %77 {offsets = [0, 0], sizes = [1, 32], strides = [1, 1]} : vector<7x64xf32> to vector<1x32xf32>
    %79 = vector.extract_strided_slice %77 {offsets = [1, 0], sizes = [1, 32], strides = [1, 1]} : vector<7x64xf32> to vector<1x32xf32>
    %cst_26 = arith.constant dense<0.000000e+00> : vector<8xf32>
    %80 = vector.multi_reduction <add>, %75, %cst_26 [1] : vector<8x32xf32> to vector<8xf32>
    %81 = vector.shape_cast %80 : vector<8xf32> to vector<8x1xf32>
    %cst_27 = arith.constant 3.200000e+01 : f32
    %82 = vector.broadcast %cst_27 : f32 to vector<8x1xf32>
    %83 = arith.divf %81, %82 : vector<8x1xf32>
    %84 = vector.broadcast %83 : vector<8x1xf32> to vector<8x32xf32>
    %85 = arith.subf %75, %84 : vector<8x32xf32>
    %86 = arith.mulf %85, %85 : vector<8x32xf32>
    %cst_28 = arith.constant dense<0.000000e+00> : vector<8xf32>
    %87 = vector.multi_reduction <add>, %86, %cst_28 [1] : vector<8x32xf32> to vector<8xf32>
    %88 = vector.shape_cast %87 : vector<8xf32> to vector<8x1xf32>
    %cst_29 = arith.constant 3.200000e+01 : f32
    %89 = vector.broadcast %cst_29 : f32 to vector<8x1xf32>
    %90 = arith.divf %88, %89 : vector<8x1xf32>
    %91 = vector.broadcast %83 : vector<8x1xf32> to vector<8x32xf32>
    %92 = arith.subf %75, %91 : vector<8x32xf32>
    %cst_30 = arith.constant 9.99999974E-6 : f32
    %93 = vector.broadcast %cst_30 : f32 to vector<8x1xf32>
    %94 = arith.addf %90, %93 : vector<8x1xf32>
    %95 = math.rsqrt %94 : vector<8x1xf32>
    %96 = vector.broadcast %95 : vector<8x1xf32> to vector<8x32xf32>
    %97 = arith.mulf %92, %96 : vector<8x32xf32>
    %98 = vector.broadcast %78 : vector<1x32xf32> to vector<8x32xf32>
    %99 = arith.mulf %97, %98 : vector<8x32xf32>
    %100 = vector.broadcast %79 : vector<1x32xf32> to vector<8x32xf32>
    %101 = arith.addf %99, %100 : vector<8x32xf32>
    %c0_31 = arith.constant 0 : index
    %c0_32 = arith.constant 0 : index
    %c0_33 = arith.constant 0 : index
    %102 = vector.load %arg6[%c0_31, %c0_32, %c0_33] : memref<2x32x96xf32, #tpu.memory_space<vmem>>, vector<1x32x96xf32>
    %103 = vector.shape_cast %102 : vector<1x32x96xf32> to vector<32x96xf32>
    %cst_34 = arith.constant dense<0.000000e+00> : vector<8x96xf32>
    %104 = tpu.matmul %101, %103, %cst_34 {dimension_numbers = #tpu.dot_dimension_numbers<[1], [0], [0], [1], [0, 0, 1, 1], [], []>} : vector<8x32xf32>, vector<32x96xf32>, vector<8x96xf32> -> vector<8x96xf32>
    %105 = vector.extract_strided_slice %104 {offsets = [0, 0], sizes = [8, 8], strides = [1, 1]} : vector<8x96xf32> to vector<8x8xf32>
    %106 = vector.extract_strided_slice %104 {offsets = [0, 8], sizes = [8, 8], strides = [1, 1]} : vector<8x96xf32> to vector<8x8xf32>
    %107 = vector.extract_strided_slice %104 {offsets = [0, 16], sizes = [8, 8], strides = [1, 1]} : vector<8x96xf32> to vector<8x8xf32>
    %108 = vector.extract_strided_slice %104 {offsets = [0, 24], sizes = [8, 8], strides = [1, 1]} : vector<8x96xf32> to vector<8x8xf32>
    %109 = vector.shape_cast %105 : vector<8x8xf32> to vector<1x8x8xf32>
    %110 = vector.shape_cast %106 : vector<8x8xf32> to vector<1x8x8xf32>
    %111 = vector.shape_cast %107 : vector<8x8xf32> to vector<1x8x8xf32>
    %112 = vector.shape_cast %108 : vector<8x8xf32> to vector<1x8x8xf32>
    %113 = tpu.concatenate %109, %110, %111, %112 in 0 : vector<1x8x8xf32>, vector<1x8x8xf32>, vector<1x8x8xf32>, vector<1x8x8xf32> -> vector<4x8x8xf32>
    %114 = vector.extract_strided_slice %104 {offsets = [0, 32], sizes = [8, 8], strides = [1, 1]} : vector<8x96xf32> to vector<8x8xf32>
    %115 = vector.extract_strided_slice %104 {offsets = [0, 40], sizes = [8, 8], strides = [1, 1]} : vector<8x96xf32> to vector<8x8xf32>
    %116 = vector.extract_strided_slice %104 {offsets = [0, 48], sizes = [8, 8], strides = [1, 1]} : vector<8x96xf32> to vector<8x8xf32>
    %117 = vector.extract_strided_slice %104 {offsets = [0, 56], sizes = [8, 8], strides = [1, 1]} : vector<8x96xf32> to vector<8x8xf32>
    %118 = vector.shape_cast %114 : vector<8x8xf32> to vector<1x8x8xf32>
    %119 = vector.shape_cast %115 : vector<8x8xf32> to vector<1x8x8xf32>
    %120 = vector.shape_cast %116 : vector<8x8xf32> to vector<1x8x8xf32>
    %121 = vector.shape_cast %117 : vector<8x8xf32> to vector<1x8x8xf32>
    %122 = tpu.concatenate %118, %119, %120, %121 in 0 : vector<1x8x8xf32>, vector<1x8x8xf32>, vector<1x8x8xf32>, vector<1x8x8xf32> -> vector<4x8x8xf32>
    %123 = vector.extract_strided_slice %104 {offsets = [0, 64], sizes = [8, 8], strides = [1, 1]} : vector<8x96xf32> to vector<8x8xf32>
    %124 = vector.extract_strided_slice %104 {offsets = [0, 72], sizes = [8, 8], strides = [1, 1]} : vector<8x96xf32> to vector<8x8xf32>
    %125 = vector.extract_strided_slice %104 {offsets = [0, 80], sizes = [8, 8], strides = [1, 1]} : vector<8x96xf32> to vector<8x8xf32>
    %126 = vector.extract_strided_slice %104 {offsets = [0, 88], sizes = [8, 8], strides = [1, 1]} : vector<8x96xf32> to vector<8x8xf32>
    %127 = vector.shape_cast %123 : vector<8x8xf32> to vector<1x8x8xf32>
    %128 = vector.shape_cast %124 : vector<8x8xf32> to vector<1x8x8xf32>
    %129 = vector.shape_cast %125 : vector<8x8xf32> to vector<1x8x8xf32>
    %130 = vector.shape_cast %126 : vector<8x8xf32> to vector<1x8x8xf32>
    %131 = tpu.concatenate %127, %128, %129, %130 in 0 : vector<1x8x8xf32>, vector<1x8x8xf32>, vector<1x8x8xf32>, vector<1x8x8xf32> -> vector<4x8x8xf32>
    "tpu.trace_start"() <{level = 10 : i32, message = "hnd,hmd->hnm"}> : () -> ()
    %cst_35 = arith.constant dense<0.000000e+00> : vector<4x8x8xf32>
    %132 = tpu.matmul %113, %122, %cst_35 {dimension_numbers = #tpu.dot_dimension_numbers<[2], [2], [1], [1], [0, 0, 0, 1, 1, 1], [0], [0]>} : vector<4x8x8xf32>, vector<4x8x8xf32>, vector<4x8x8xf32> -> vector<4x8x8xf32>
    "tpu.trace_stop"() : () -> ()
    %cst_36 = arith.constant 0.353553385 : f32
    %133 = vector.broadcast %cst_36 : f32 to vector<4x8x8xf32>
    %134 = arith.mulf %132, %133 : vector<4x8x8xf32>
    %135 = vector.shape_cast %13 : vector<8x8xf32> to vector<1x8x8xf32>
    %136 = vector.broadcast %135 : vector<1x8x8xf32> to vector<4x8x8xf32>
    %137 = arith.addf %134, %136 : vector<4x8x8xf32>
    %cst_37 = arith.constant dense<0xFF800000> : vector<4x8xf32>
    %138 = vector.multi_reduction <maximumf>, %137, %cst_37 [2] : vector<4x8x8xf32> to vector<4x8xf32>
    %139 = vector.shape_cast %138 : vector<4x8xf32> to vector<4x8x1xf32>
    %140 = vector.broadcast %139 : vector<4x8x1xf32> to vector<4x8x8xf32>
    %141 = arith.subf %137, %140 : vector<4x8x8xf32>
    %142 = math.exp %141 : vector<4x8x8xf32>
    %cst_38 = arith.constant dense<0.000000e+00> : vector<4x8xf32>
    %143 = vector.multi_reduction <add>, %142, %cst_38 [2] : vector<4x8x8xf32> to vector<4x8xf32>
    %144 = vector.shape_cast %143 : vector<4x8xf32> to vector<4x8x1xf32>
    %145 = tpu.reciprocal %144 {approx = true} : vector<4x8x1xf32> -> vector<4x8x1xf32>
    %146 = vector.broadcast %145 : vector<4x8x1xf32> to vector<4x8x8xf32>
    %147 = arith.mulf %142, %146 : vector<4x8x8xf32>
    "tpu.trace_start"() <{level = 10 : i32, message = "hnm,hmd->hnd"}> : () -> ()
    %cst_39 = arith.constant dense<0.000000e+00> : vector<4x8x8xf32>
    %148 = tpu.matmul %147, %131, %cst_39 {dimension_numbers = #tpu.dot_dimension_numbers<[2], [1], [1], [2], [0, 0, 0, 1, 1, 2], [0], [0]>} : vector<4x8x8xf32>, vector<4x8x8xf32>, vector<4x8x8xf32> -> vector<4x8x8xf32>
    "tpu.trace_stop"() : () -> ()
    %149 = vector.extract_strided_slice %148 {offsets = [0, 0, 0], sizes = [1, 8, 8], strides = [1, 1, 1]} : vector<4x8x8xf32> to vector<1x8x8xf32>
    %150 = vector.shape_cast %149 : vector<1x8x8xf32> to vector<8x8xf32>
    %151 = vector.extract_strided_slice %148 {offsets = [1, 0, 0], sizes = [1, 8, 8], strides = [1, 1, 1]} : vector<4x8x8xf32> to vector<1x8x8xf32>
    %152 = vector.shape_cast %151 : vector<1x8x8xf32> to vector<8x8xf32>
    %153 = vector.extract_strided_slice %148 {offsets = [2, 0, 0], sizes = [1, 8, 8], strides = [1, 1, 1]} : vector<4x8x8xf32> to vector<1x8x8xf32>
    %154 = vector.shape_cast %153 : vector<1x8x8xf32> to vector<8x8xf32>
    %155 = vector.extract_strided_slice %148 {offsets = [3, 0, 0], sizes = [1, 8, 8], strides = [1, 1, 1]} : vector<4x8x8xf32> to vector<1x8x8xf32>
    %156 = vector.shape_cast %155 : vector<1x8x8xf32> to vector<8x8xf32>
    %157 = tpu.concatenate %150, %152, %154, %156 in 1 : vector<8x8xf32>, vector<8x8xf32>, vector<8x8xf32>, vector<8x8xf32> -> vector<8x32xf32>
    %c0_40 = arith.constant 0 : index
    %c0_41 = arith.constant 0 : index
    %c0_42 = arith.constant 0 : index
    %158 = vector.load %arg7[%c0_40, %c0_41, %c0_42] : memref<2x32x32xf32, #tpu.memory_space<vmem>>, vector<1x32x32xf32>
    %159 = vector.shape_cast %158 : vector<1x32x32xf32> to vector<32x32xf32>
    %cst_43 = arith.constant dense<0.000000e+00> : vector<8x32xf32>
    %160 = tpu.matmul %157, %159, %cst_43 {dimension_numbers = #tpu.dot_dimension_numbers<[1], [0], [0], [1], [0, 0, 1, 1], [], []>} : vector<8x32xf32>, vector<32x32xf32>, vector<8x32xf32> -> vector<8x32xf32>
    %161 = arith.addf %75, %160 : vector<8x32xf32>
    %162 = vector.extract_strided_slice %77 {offsets = [4, 0], sizes = [1, 32], strides = [1, 1]} : vector<7x64xf32> to vector<1x32xf32>
    %163 = vector.broadcast %162 : vector<1x32xf32> to vector<8x32xf32>
    %164 = arith.addf %161, %163 : vector<8x32xf32>
    %165 = vector.extract_strided_slice %77 {offsets = [2, 0], sizes = [1, 32], strides = [1, 1]} : vector<7x64xf32> to vector<1x32xf32>
    %166 = vector.extract_strided_slice %77 {offsets = [3, 0], sizes = [1, 32], strides = [1, 1]} : vector<7x64xf32> to vector<1x32xf32>
    %cst_44 = arith.constant dense<0.000000e+00> : vector<8xf32>
    %167 = vector.multi_reduction <add>, %164, %cst_44 [1] : vector<8x32xf32> to vector<8xf32>
    %168 = vector.shape_cast %167 : vector<8xf32> to vector<8x1xf32>
    %cst_45 = arith.constant 3.200000e+01 : f32
    %169 = vector.broadcast %cst_45 : f32 to vector<8x1xf32>
    %170 = arith.divf %168, %169 : vector<8x1xf32>
    %171 = vector.broadcast %170 : vector<8x1xf32> to vector<8x32xf32>
    %172 = arith.subf %164, %171 : vector<8x32xf32>
    %173 = arith.mulf %172, %172 : vector<8x32xf32>
    %cst_46 = arith.constant dense<0.000000e+00> : vector<8xf32>
    %174 = vector.multi_reduction <add>, %173, %cst_46 [1] : vector<8x32xf32> to vector<8xf32>
    %175 = vector.shape_cast %174 : vector<8xf32> to vector<8x1xf32>
    %cst_47 = arith.constant 3.200000e+01 : f32
    %176 = vector.broadcast %cst_47 : f32 to vector<8x1xf32>
    %177 = arith.divf %175, %176 : vector<8x1xf32>
    %178 = vector.broadcast %170 : vector<8x1xf32> to vector<8x32xf32>
    %179 = arith.subf %164, %178 : vector<8x32xf32>
    %cst_48 = arith.constant 9.99999974E-6 : f32
    %180 = vector.broadcast %cst_48 : f32 to vector<8x1xf32>
    %181 = arith.addf %177, %180 : vector<8x1xf32>
    %182 = math.rsqrt %181 : vector<8x1xf32>
    %183 = vector.broadcast %182 : vector<8x1xf32> to vector<8x32xf32>
    %184 = arith.mulf %179, %183 : vector<8x32xf32>
    %185 = vector.broadcast %165 : vector<1x32xf32> to vector<8x32xf32>
    %186 = arith.mulf %184, %185 : vector<8x32xf32>
    %187 = vector.broadcast %166 : vector<1x32xf32> to vector<8x32xf32>
    %188 = arith.addf %186, %187 : vector<8x32xf32>
    %c0_49 = arith.constant 0 : index
    %c0_50 = arith.constant 0 : index
    %c0_51 = arith.constant 0 : index
    %189 = vector.load %arg8[%c0_49, %c0_50, %c0_51] : memref<2x32x64xf32, #tpu.memory_space<vmem>>, vector<1x32x64xf32>
    %190 = vector.shape_cast %189 : vector<1x32x64xf32> to vector<32x64xf32>
    %cst_52 = arith.constant dense<0.000000e+00> : vector<8x64xf32>
    %191 = tpu.matmul %188, %190, %cst_52 {dimension_numbers = #tpu.dot_dimension_numbers<[1], [0], [0], [1], [0, 0, 1, 1], [], []>} : vector<8x32xf32>, vector<32x64xf32>, vector<8x64xf32> -> vector<8x64xf32>
    %192 = vector.extract_strided_slice %77 {offsets = [6, 0], sizes = [1, 64], strides = [1, 1]} : vector<7x64xf32> to vector<1x64xf32>
    %193 = vector.broadcast %192 : vector<1x64xf32> to vector<8x64xf32>
    %194 = arith.addf %191, %193 : vector<8x64xf32>
    %195 = arith.mulf %194, %194 : vector<8x64xf32>
    %196 = arith.mulf %194, %195 : vector<8x64xf32>
    %cst_53 = arith.constant 4.471500e-02 : f32
    %197 = vector.broadcast %cst_53 : f32 to vector<8x64xf32>
    %198 = arith.mulf %197, %196 : vector<8x64xf32>
    %199 = arith.addf %194, %198 : vector<8x64xf32>
    %cst_54 = arith.constant 0.797884583 : f32
    %200 = vector.broadcast %cst_54 : f32 to vector<8x64xf32>
    %201 = arith.mulf %200, %199 : vector<8x64xf32>
    %202 = math.tanh %201 : vector<8x64xf32>
    %cst_55 = arith.constant 1.000000e+00 : f32
    %203 = vector.broadcast %cst_55 : f32 to vector<8x64xf32>
    %204 = arith.addf %203, %202 : vector<8x64xf32>
    %cst_56 = arith.constant 5.000000e-01 : f32
    %205 = vector.broadcast %cst_56 : f32 to vector<8x64xf32>
    %206 = arith.mulf %205, %204 : vector<8x64xf32>
    %207 = arith.mulf %194, %206 : vector<8x64xf32>
    %c0_57 = arith.constant 0 : index
    %c0_58 = arith.constant 0 : index
    %c0_59 = arith.constant 0 : index
    %208 = vector.load %arg9[%c0_57, %c0_58, %c0_59] : memref<2x64x32xf32, #tpu.memory_space<vmem>>, vector<1x64x32xf32>
    %209 = vector.shape_cast %208 : vector<1x64x32xf32> to vector<64x32xf32>
    %cst_60 = arith.constant dense<0.000000e+00> : vector<8x32xf32>
    %210 = tpu.matmul %207, %209, %cst_60 {dimension_numbers = #tpu.dot_dimension_numbers<[1], [0], [0], [1], [0, 0, 1, 1], [], []>} : vector<8x64xf32>, vector<64x32xf32>, vector<8x32xf32> -> vector<8x32xf32>
    %211 = arith.addf %164, %210 : vector<8x32xf32>
    %212 = vector.extract_strided_slice %77 {offsets = [5, 0], sizes = [1, 32], strides = [1, 1]} : vector<7x64xf32> to vector<1x32xf32>
    %213 = vector.broadcast %212 : vector<1x32xf32> to vector<8x32xf32>
    %214 = arith.addf %211, %213 : vector<8x32xf32>
    %c1 = arith.constant 1 : index
    %c0_61 = arith.constant 0 : index
    %c0_62 = arith.constant 0 : index
    %215 = vector.load %arg10[%c1, %c0_61, %c0_62] : memref<2x7x64xf32, #tpu.memory_space<vmem>>, vector<1x7x64xf32>
    %216 = vector.shape_cast %215 : vector<1x7x64xf32> to vector<7x64xf32>
    %217 = vector.extract_strided_slice %216 {offsets = [0, 0], sizes = [1, 32], strides = [1, 1]} : vector<7x64xf32> to vector<1x32xf32>
    %218 = vector.extract_strided_slice %216 {offsets = [1, 0], sizes = [1, 32], strides = [1, 1]} : vector<7x64xf32> to vector<1x32xf32>
    %cst_63 = arith.constant dense<0.000000e+00> : vector<8xf32>
    %219 = vector.multi_reduction <add>, %214, %cst_63 [1] : vector<8x32xf32> to vector<8xf32>
    %220 = vector.shape_cast %219 : vector<8xf32> to vector<8x1xf32>
    %cst_64 = arith.constant 3.200000e+01 : f32
    %221 = vector.broadcast %cst_64 : f32 to vector<8x1xf32>
    %222 = arith.divf %220, %221 : vector<8x1xf32>
    %223 = vector.broadcast %222 : vector<8x1xf32> to vector<8x32xf32>
    %224 = arith.subf %214, %223 : vector<8x32xf32>
    %225 = arith.mulf %224, %224 : vector<8x32xf32>
    %cst_65 = arith.constant dense<0.000000e+00> : vector<8xf32>
    %226 = vector.multi_reduction <add>, %225, %cst_65 [1] : vector<8x32xf32> to vector<8xf32>
    %227 = vector.shape_cast %226 : vector<8xf32> to vector<8x1xf32>
    %cst_66 = arith.constant 3.200000e+01 : f32
    %228 = vector.broadcast %cst_66 : f32 to vector<8x1xf32>
    %229 = arith.divf %227, %228 : vector<8x1xf32>
    %230 = vector.broadcast %222 : vector<8x1xf32> to vector<8x32xf32>
    %231 = arith.subf %214, %230 : vector<8x32xf32>
    %cst_67 = arith.constant 9.99999974E-6 : f32
    %232 = vector.broadcast %cst_67 : f32 to vector<8x1xf32>
    %233 = arith.addf %229, %232 : vector<8x1xf32>
    %234 = math.rsqrt %233 : vector<8x1xf32>
    %235 = vector.broadcast %234 : vector<8x1xf32> to vector<8x32xf32>
    %236 = arith.mulf %231, %235 : vector<8x32xf32>
    %237 = vector.broadcast %217 : vector<1x32xf32> to vector<8x32xf32>
    %238 = arith.mulf %236, %237 : vector<8x32xf32>
    %239 = vector.broadcast %218 : vector<1x32xf32> to vector<8x32xf32>
    %240 = arith.addf %238, %239 : vector<8x32xf32>
    %c1_68 = arith.constant 1 : index
    %c0_69 = arith.constant 0 : index
    %c0_70 = arith.constant 0 : index
    %241 = vector.load %arg6[%c1_68, %c0_69, %c0_70] : memref<2x32x96xf32, #tpu.memory_space<vmem>>, vector<1x32x96xf32>
    %242 = vector.shape_cast %241 : vector<1x32x96xf32> to vector<32x96xf32>
    %cst_71 = arith.constant dense<0.000000e+00> : vector<8x96xf32>
    %243 = tpu.matmul %240, %242, %cst_71 {dimension_numbers = #tpu.dot_dimension_numbers<[1], [0], [0], [1], [0, 0, 1, 1], [], []>} : vector<8x32xf32>, vector<32x96xf32>, vector<8x96xf32> -> vector<8x96xf32>
    %244 = vector.extract_strided_slice %243 {offsets = [0, 0], sizes = [8, 8], strides = [1, 1]} : vector<8x96xf32> to vector<8x8xf32>
    %245 = vector.extract_strided_slice %243 {offsets = [0, 8], sizes = [8, 8], strides = [1, 1]} : vector<8x96xf32> to vector<8x8xf32>
    %246 = vector.extract_strided_slice %243 {offsets = [0, 16], sizes = [8, 8], strides = [1, 1]} : vector<8x96xf32> to vector<8x8xf32>
    %247 = vector.extract_strided_slice %243 {offsets = [0, 24], sizes = [8, 8], strides = [1, 1]} : vector<8x96xf32> to vector<8x8xf32>
    %248 = vector.shape_cast %244 : vector<8x8xf32> to vector<1x8x8xf32>
    %249 = vector.shape_cast %245 : vector<8x8xf32> to vector<1x8x8xf32>
    %250 = vector.shape_cast %246 : vector<8x8xf32> to vector<1x8x8xf32>
    %251 = vector.shape_cast %247 : vector<8x8xf32> to vector<1x8x8xf32>
    %252 = tpu.concatenate %248, %249, %250, %251 in 0 : vector<1x8x8xf32>, vector<1x8x8xf32>, vector<1x8x8xf32>, vector<1x8x8xf32> -> vector<4x8x8xf32>
    %253 = vector.extract_strided_slice %243 {offsets = [0, 32], sizes = [8, 8], strides = [1, 1]} : vector<8x96xf32> to vector<8x8xf32>
    %254 = vector.extract_strided_slice %243 {offsets = [0, 40], sizes = [8, 8], strides = [1, 1]} : vector<8x96xf32> to vector<8x8xf32>
    %255 = vector.extract_strided_slice %243 {offsets = [0, 48], sizes = [8, 8], strides = [1, 1]} : vector<8x96xf32> to vector<8x8xf32>
    %256 = vector.extract_strided_slice %243 {offsets = [0, 56], sizes = [8, 8], strides = [1, 1]} : vector<8x96xf32> to vector<8x8xf32>
    %257 = vector.shape_cast %253 : vector<8x8xf32> to vector<1x8x8xf32>
    %258 = vector.shape_cast %254 : vector<8x8xf32> to vector<1x8x8xf32>
    %259 = vector.shape_cast %255 : vector<8x8xf32> to vector<1x8x8xf32>
    %260 = vector.shape_cast %256 : vector<8x8xf32> to vector<1x8x8xf32>
    %261 = tpu.concatenate %257, %258, %259, %260 in 0 : vector<1x8x8xf32>, vector<1x8x8xf32>, vector<1x8x8xf32>, vector<1x8x8xf32> -> vector<4x8x8xf32>
    %262 = vector.extract_strided_slice %243 {offsets = [0, 64], sizes = [8, 8], strides = [1, 1]} : vector<8x96xf32> to vector<8x8xf32>
    %263 = vector.extract_strided_slice %243 {offsets = [0, 72], sizes = [8, 8], strides = [1, 1]} : vector<8x96xf32> to vector<8x8xf32>
    %264 = vector.extract_strided_slice %243 {offsets = [0, 80], sizes = [8, 8], strides = [1, 1]} : vector<8x96xf32> to vector<8x8xf32>
    %265 = vector.extract_strided_slice %243 {offsets = [0, 88], sizes = [8, 8], strides = [1, 1]} : vector<8x96xf32> to vector<8x8xf32>
    %266 = vector.shape_cast %262 : vector<8x8xf32> to vector<1x8x8xf32>
    %267 = vector.shape_cast %263 : vector<8x8xf32> to vector<1x8x8xf32>
    %268 = vector.shape_cast %264 : vector<8x8xf32> to vector<1x8x8xf32>
    %269 = vector.shape_cast %265 : vector<8x8xf32> to vector<1x8x8xf32>
    %270 = tpu.concatenate %266, %267, %268, %269 in 0 : vector<1x8x8xf32>, vector<1x8x8xf32>, vector<1x8x8xf32>, vector<1x8x8xf32> -> vector<4x8x8xf32>
    "tpu.trace_start"() <{level = 10 : i32, message = "hnd,hmd->hnm"}> : () -> ()
    %cst_72 = arith.constant dense<0.000000e+00> : vector<4x8x8xf32>
    %271 = tpu.matmul %252, %261, %cst_72 {dimension_numbers = #tpu.dot_dimension_numbers<[2], [2], [1], [1], [0, 0, 0, 1, 1, 1], [0], [0]>} : vector<4x8x8xf32>, vector<4x8x8xf32>, vector<4x8x8xf32> -> vector<4x8x8xf32>
    "tpu.trace_stop"() : () -> ()
    %cst_73 = arith.constant 0.353553385 : f32
    %272 = vector.broadcast %cst_73 : f32 to vector<4x8x8xf32>
    %273 = arith.mulf %271, %272 : vector<4x8x8xf32>
    %274 = vector.shape_cast %13 : vector<8x8xf32> to vector<1x8x8xf32>
    %275 = vector.broadcast %274 : vector<1x8x8xf32> to vector<4x8x8xf32>
    %276 = arith.addf %273, %275 : vector<4x8x8xf32>
    %cst_74 = arith.constant dense<0xFF800000> : vector<4x8xf32>
    %277 = vector.multi_reduction <maximumf>, %276, %cst_74 [2] : vector<4x8x8xf32> to vector<4x8xf32>
    %278 = vector.shape_cast %277 : vector<4x8xf32> to vector<4x8x1xf32>
    %279 = vector.broadcast %278 : vector<4x8x1xf32> to vector<4x8x8xf32>
    %280 = arith.subf %276, %279 : vector<4x8x8xf32>
    %281 = math.exp %280 : vector<4x8x8xf32>
    %cst_75 = arith.constant dense<0.000000e+00> : vector<4x8xf32>
    %282 = vector.multi_reduction <add>, %281, %cst_75 [2] : vector<4x8x8xf32> to vector<4x8xf32>
    %283 = vector.shape_cast %282 : vector<4x8xf32> to vector<4x8x1xf32>
    %284 = tpu.reciprocal %283 {approx = true} : vector<4x8x1xf32> -> vector<4x8x1xf32>
    %285 = vector.broadcast %284 : vector<4x8x1xf32> to vector<4x8x8xf32>
    %286 = arith.mulf %281, %285 : vector<4x8x8xf32>
    "tpu.trace_start"() <{level = 10 : i32, message = "hnm,hmd->hnd"}> : () -> ()
    %cst_76 = arith.constant dense<0.000000e+00> : vector<4x8x8xf32>
    %287 = tpu.matmul %286, %270, %cst_76 {dimension_numbers = #tpu.dot_dimension_numbers<[2], [1], [1], [2], [0, 0, 0, 1, 1, 2], [0], [0]>} : vector<4x8x8xf32>, vector<4x8x8xf32>, vector<4x8x8xf32> -> vector<4x8x8xf32>
    "tpu.trace_stop"() : () -> ()
    %288 = vector.extract_strided_slice %287 {offsets = [0, 0, 0], sizes = [1, 8, 8], strides = [1, 1, 1]} : vector<4x8x8xf32> to vector<1x8x8xf32>
    %289 = vector.shape_cast %288 : vector<1x8x8xf32> to vector<8x8xf32>
    %290 = vector.extract_strided_slice %287 {offsets = [1, 0, 0], sizes = [1, 8, 8], strides = [1, 1, 1]} : vector<4x8x8xf32> to vector<1x8x8xf32>
    %291 = vector.shape_cast %290 : vector<1x8x8xf32> to vector<8x8xf32>
    %292 = vector.extract_strided_slice %287 {offsets = [2, 0, 0], sizes = [1, 8, 8], strides = [1, 1, 1]} : vector<4x8x8xf32> to vector<1x8x8xf32>
    %293 = vector.shape_cast %292 : vector<1x8x8xf32> to vector<8x8xf32>
    %294 = vector.extract_strided_slice %287 {offsets = [3, 0, 0], sizes = [1, 8, 8], strides = [1, 1, 1]} : vector<4x8x8xf32> to vector<1x8x8xf32>
    %295 = vector.shape_cast %294 : vector<1x8x8xf32> to vector<8x8xf32>
    %296 = tpu.concatenate %289, %291, %293, %295 in 1 : vector<8x8xf32>, vector<8x8xf32>, vector<8x8xf32>, vector<8x8xf32> -> vector<8x32xf32>
    %c1_77 = arith.constant 1 : index
    %c0_78 = arith.constant 0 : index
    %c0_79 = arith.constant 0 : index
    %297 = vector.load %arg7[%c1_77, %c0_78, %c0_79] : memref<2x32x32xf32, #tpu.memory_space<vmem>>, vector<1x32x32xf32>
    %298 = vector.shape_cast %297 : vector<1x32x32xf32> to vector<32x32xf32>
    %cst_80 = arith.constant dense<0.000000e+00> : vector<8x32xf32>
    %299 = tpu.matmul %296, %298, %cst_80 {dimension_numbers = #tpu.dot_dimension_numbers<[1], [0], [0], [1], [0, 0, 1, 1], [], []>} : vector<8x32xf32>, vector<32x32xf32>, vector<8x32xf32> -> vector<8x32xf32>
    %300 = arith.addf %214, %299 : vector<8x32xf32>
    %301 = vector.extract_strided_slice %216 {offsets = [4, 0], sizes = [1, 32], strides = [1, 1]} : vector<7x64xf32> to vector<1x32xf32>
    %302 = vector.broadcast %301 : vector<1x32xf32> to vector<8x32xf32>
    %303 = arith.addf %300, %302 : vector<8x32xf32>
    %304 = vector.extract_strided_slice %216 {offsets = [2, 0], sizes = [1, 32], strides = [1, 1]} : vector<7x64xf32> to vector<1x32xf32>
    %305 = vector.extract_strided_slice %216 {offsets = [3, 0], sizes = [1, 32], strides = [1, 1]} : vector<7x64xf32> to vector<1x32xf32>
    %cst_81 = arith.constant dense<0.000000e+00> : vector<8xf32>
    %306 = vector.multi_reduction <add>, %303, %cst_81 [1] : vector<8x32xf32> to vector<8xf32>
    %307 = vector.shape_cast %306 : vector<8xf32> to vector<8x1xf32>
    %cst_82 = arith.constant 3.200000e+01 : f32
    %308 = vector.broadcast %cst_82 : f32 to vector<8x1xf32>
    %309 = arith.divf %307, %308 : vector<8x1xf32>
    %310 = vector.broadcast %309 : vector<8x1xf32> to vector<8x32xf32>
    %311 = arith.subf %303, %310 : vector<8x32xf32>
    %312 = arith.mulf %311, %311 : vector<8x32xf32>
    %cst_83 = arith.constant dense<0.000000e+00> : vector<8xf32>
    %313 = vector.multi_reduction <add>, %312, %cst_83 [1] : vector<8x32xf32> to vector<8xf32>
    %314 = vector.shape_cast %313 : vector<8xf32> to vector<8x1xf32>
    %cst_84 = arith.constant 3.200000e+01 : f32
    %315 = vector.broadcast %cst_84 : f32 to vector<8x1xf32>
    %316 = arith.divf %314, %315 : vector<8x1xf32>
    %317 = vector.broadcast %309 : vector<8x1xf32> to vector<8x32xf32>
    %318 = arith.subf %303, %317 : vector<8x32xf32>
    %cst_85 = arith.constant 9.99999974E-6 : f32
    %319 = vector.broadcast %cst_85 : f32 to vector<8x1xf32>
    %320 = arith.addf %316, %319 : vector<8x1xf32>
    %321 = math.rsqrt %320 : vector<8x1xf32>
    %322 = vector.broadcast %321 : vector<8x1xf32> to vector<8x32xf32>
    %323 = arith.mulf %318, %322 : vector<8x32xf32>
    %324 = vector.broadcast %304 : vector<1x32xf32> to vector<8x32xf32>
    %325 = arith.mulf %323, %324 : vector<8x32xf32>
    %326 = vector.broadcast %305 : vector<1x32xf32> to vector<8x32xf32>
    %327 = arith.addf %325, %326 : vector<8x32xf32>
    %c1_86 = arith.constant 1 : index
    %c0_87 = arith.constant 0 : index
    %c0_88 = arith.constant 0 : index
    %328 = vector.load %arg8[%c1_86, %c0_87, %c0_88] : memref<2x32x64xf32, #tpu.memory_space<vmem>>, vector<1x32x64xf32>
    %329 = vector.shape_cast %328 : vector<1x32x64xf32> to vector<32x64xf32>
    %cst_89 = arith.constant dense<0.000000e+00> : vector<8x64xf32>
    %330 = tpu.matmul %327, %329, %cst_89 {dimension_numbers = #tpu.dot_dimension_numbers<[1], [0], [0], [1], [0, 0, 1, 1], [], []>} : vector<8x32xf32>, vector<32x64xf32>, vector<8x64xf32> -> vector<8x64xf32>
    %331 = vector.extract_strided_slice %216 {offsets = [6, 0], sizes = [1, 64], strides = [1, 1]} : vector<7x64xf32> to vector<1x64xf32>
    %332 = vector.broadcast %331 : vector<1x64xf32> to vector<8x64xf32>
    %333 = arith.addf %330, %332 : vector<8x64xf32>
    %334 = arith.mulf %333, %333 : vector<8x64xf32>
    %335 = arith.mulf %333, %334 : vector<8x64xf32>
    %cst_90 = arith.constant 4.471500e-02 : f32
    %336 = vector.broadcast %cst_90 : f32 to vector<8x64xf32>
    %337 = arith.mulf %336, %335 : vector<8x64xf32>
    %338 = arith.addf %333, %337 : vector<8x64xf32>
    %cst_91 = arith.constant 0.797884583 : f32
    %339 = vector.broadcast %cst_91 : f32 to vector<8x64xf32>
    %340 = arith.mulf %339, %338 : vector<8x64xf32>
    %341 = math.tanh %340 : vector<8x64xf32>
    %cst_92 = arith.constant 1.000000e+00 : f32
    %342 = vector.broadcast %cst_92 : f32 to vector<8x64xf32>
    %343 = arith.addf %342, %341 : vector<8x64xf32>
    %cst_93 = arith.constant 5.000000e-01 : f32
    %344 = vector.broadcast %cst_93 : f32 to vector<8x64xf32>
    %345 = arith.mulf %344, %343 : vector<8x64xf32>
    %346 = arith.mulf %333, %345 : vector<8x64xf32>
    %c1_94 = arith.constant 1 : index
    %c0_95 = arith.constant 0 : index
    %c0_96 = arith.constant 0 : index
    %347 = vector.load %arg9[%c1_94, %c0_95, %c0_96] : memref<2x64x32xf32, #tpu.memory_space<vmem>>, vector<1x64x32xf32>
    %348 = vector.shape_cast %347 : vector<1x64x32xf32> to vector<64x32xf32>
    %cst_97 = arith.constant dense<0.000000e+00> : vector<8x32xf32>
    %349 = tpu.matmul %346, %348, %cst_97 {dimension_numbers = #tpu.dot_dimension_numbers<[1], [0], [0], [1], [0, 0, 1, 1], [], []>} : vector<8x64xf32>, vector<64x32xf32>, vector<8x32xf32> -> vector<8x32xf32>
    %350 = arith.addf %303, %349 : vector<8x32xf32>
    %351 = vector.extract_strided_slice %216 {offsets = [5, 0], sizes = [1, 32], strides = [1, 1]} : vector<7x64xf32> to vector<1x32xf32>
    %352 = vector.broadcast %351 : vector<1x32xf32> to vector<8x32xf32>
    %353 = arith.addf %350, %352 : vector<8x32xf32>
    %354 = vector.extract_strided_slice %3 {offsets = [7, 0], sizes = [1, 32], strides = [1, 1]} : vector<9x256xf32> to vector<1x32xf32>
    %355 = vector.extract_strided_slice %3 {offsets = [8, 0], sizes = [1, 32], strides = [1, 1]} : vector<9x256xf32> to vector<1x32xf32>
    %cst_98 = arith.constant dense<0.000000e+00> : vector<8xf32>
    %356 = vector.multi_reduction <add>, %353, %cst_98 [1] : vector<8x32xf32> to vector<8xf32>
    %357 = vector.shape_cast %356 : vector<8xf32> to vector<8x1xf32>
    %cst_99 = arith.constant 3.200000e+01 : f32
    %358 = vector.broadcast %cst_99 : f32 to vector<8x1xf32>
    %359 = arith.divf %357, %358 : vector<8x1xf32>
    %360 = vector.broadcast %359 : vector<8x1xf32> to vector<8x32xf32>
    %361 = arith.subf %353, %360 : vector<8x32xf32>
    %362 = arith.mulf %361, %361 : vector<8x32xf32>
    %cst_100 = arith.constant dense<0.000000e+00> : vector<8xf32>
    %363 = vector.multi_reduction <add>, %362, %cst_100 [1] : vector<8x32xf32> to vector<8xf32>
    %364 = vector.shape_cast %363 : vector<8xf32> to vector<8x1xf32>
    %cst_101 = arith.constant 3.200000e+01 : f32
    %365 = vector.broadcast %cst_101 : f32 to vector<8x1xf32>
    %366 = arith.divf %364, %365 : vector<8x1xf32>
    %367 = vector.broadcast %359 : vector<8x1xf32> to vector<8x32xf32>
    %368 = arith.subf %353, %367 : vector<8x32xf32>
    %cst_102 = arith.constant 9.99999974E-6 : f32
    %369 = vector.broadcast %cst_102 : f32 to vector<8x1xf32>
    %370 = arith.addf %366, %369 : vector<8x1xf32>
    %371 = math.rsqrt %370 : vector<8x1xf32>
    %372 = vector.broadcast %371 : vector<8x1xf32> to vector<8x32xf32>
    %373 = arith.mulf %368, %372 : vector<8x32xf32>
    %374 = vector.broadcast %354 : vector<1x32xf32> to vector<8x32xf32>
    %375 = arith.mulf %373, %374 : vector<8x32xf32>
    %376 = vector.broadcast %355 : vector<1x32xf32> to vector<8x32xf32>
    %377 = arith.addf %375, %376 : vector<8x32xf32>
    %c0_103 = arith.constant 0 : index
    %c0_104 = arith.constant 0 : index
    %378 = vector.load %arg5[%c0_103, %c0_104] : memref<32x256xf32, #tpu.memory_space<vmem>>, vector<32x256xf32>
    %cst_105 = arith.constant dense<0.000000e+00> : vector<8x256xf32>
    %379 = tpu.matmul %377, %378, %cst_105 {dimension_numbers = #tpu.dot_dimension_numbers<[1], [0], [0], [1], [0, 0, 1, 1], [], []>} : vector<8x32xf32>, vector<32x256xf32>, vector<8x256xf32> -> vector<8x256xf32>
    %380 = vector.extract_strided_slice %3 {offsets = [2, 0], sizes = [1, 256], strides = [1, 1]} : vector<9x256xf32> to vector<1x256xf32>
    %381 = vector.broadcast %380 : vector<1x256xf32> to vector<8x256xf32>
    %382 = arith.addf %379, %381 : vector<8x256xf32>
    %383 = arith.subf %382, %0 : vector<8x256xf32>
    %384 = math.absf %383 : vector<8x256xf32>
    %385 = vector.broadcast %1 : vector<8x1xf32> to vector<8x256xf32>
    %386 = arith.mulf %384, %385 : vector<8x256xf32>
    %387 = vector.shape_cast %386 : vector<8x256xf32> to vector<1x8x256xf32>
    %cst_106 = arith.constant dense<0.000000e+00> : vector<1xf32>
    %388 = vector.multi_reduction <add>, %387, %cst_106 [1, 2] : vector<1x8x256xf32> to vector<1xf32>
    %389 = vector.shape_cast %388 : vector<1xf32> to vector<1x1x1xf32>
    %390 = vector.extract %389[0, 0, 0] : f32 from vector<1x1x1xf32>
    %cst_107 = arith.constant 2.048000e+03 : f32
    %391 = arith.divf %390, %cst_107 : f32
    %c0_108 = arith.constant 0 : index
    %c0_109 = arith.constant 0 : index
    %392 = memref.load %arg11[%c0_108, %c0_109] : memref<1x1xf32, #tpu.memory_space<smem>>
    memref.store %391, %arg11[%c0_108, %c0_109] : memref<1x1xf32, #tpu.memory_space<smem>>
    return
  }
}

</mosaic_0001>

<bundles_post_ra>
// kernel: simmim_forward.1
= control target key start
LH: loop header
LB: loop body
LE: loop exit
PB: predicated region body
PF: predicated region fallthrough
CT: control target
= control target key end

     0   :  { %s3742_s0 = inlined_call_operand.vmem [shape: f32[8,256], index: 0, kind: input, shape index: {}]   ;;  %s3743_s1 = inlined_call_operand.vmem [shape: f32[8,1], index: 1, kind: input, shape index: {}]   ;;  %s3744_s2 = inlined_call_operand.vmem [shape: f32[8,32], index: 2, kind: input, shape index: {}]   ;;  %s3745_s3 = inlined_call_operand.vmem [shape: f32[9,256], index: 3, kind: input, shape index: {}]   ;;  %s3746_s4 = inlined_call_operand.vmem [shape: f32[256,32], index: 4, kind: input, shape index: {}]   ;;  %s3747_s5 = inlined_call_operand.vmem [shape: f32[32,256], index: 5, kind: input, shape index: {}]   ;;  %s3748_s6 = inlined_call_operand.vmem [shape: f32[2,32,96], index: 6, kind: input, shape index: {}]   ;;  %s3749_s7 = inlined_call_operand.vmem [shape: f32[2,32,32], index: 7, kind: input, shape index: {}]   ;;  %s3750_s8 = inlined_call_operand.vmem [shape: f32[2,32,64], index: 8, kind: input, shape index: {}]   ;;  %s3751_s9 = inlined_call_operand.vmem [shape: f32[2,64,32], index: 9, kind: input, shape index: {}]   ;;  %s3752_s10 = inlined_call_operand.vmem [shape: f32[2,7,64], index: 10, kind: input, shape index: {}]   ;;  %s3753_s11 = inlined_call_operand.hbm [shape: f32[1,1], index: 11, kind: output, shape index: {}]  }
   0x1   :  { %v39_v0 = vld [vmem:[%s3742_s0] sm:$0xff]  ;;  %v40_v1 = vld [vmem:[%s3742_s0 + $0x8] sm:$0xff] }
   0x2   :  { %16 = vsyncpa [#allocation3], 0  ;;  %v54_v2 = vadd.f32 %v40_v1, %v39_v0  ;;  %v107_v3 = vld [vmem:[%s3746_s4 + $0x80] sm:$0xff]  ;;  %v108_v4 = vld [vmem:[%s3746_s4 + $0x88] sm:$0xff]  ;;  %v46_v60 = vlaneseq  ;;  %vm197_vm0 = vcmask 261120   ;;  %vm3069_vm3 = vmmov 0  }
   0x3   :  { %v91_v5 = vld [vmem:[%s3746_s4] sm:$0xff]  ;;  %v2882_v6 = vpack.c.bf16 %v108_v4, %v107_v3  ;;  %v92_v7 = vld [vmem:[%s3746_s4 + $0x8] sm:$0xff]  ;;  %v109_v8 = vld [vmem:[%s3746_s4 + $0x90] sm:$0xff]  ;;  %s3071_s25 = smov 120   ;;  %s3072_s26 = smov 112   ;;  %vm345_vm4 = vcmask 64512  }
   0x4   :  { %55 = vadd.xlane.f32.xlu0 %v54_v2  ;;  %v110_v9 = vld [vmem:[%s3746_s4 + $0x98] sm:$0xff]  ;;  %v2884_v10 = vpack.c.bf16 %v92_v7, %v91_v5  ;;  %v93_v12 = vld [vmem:[%s3746_s4 + $0x10] sm:$0xff]  ;;  %v111_v14 = vld [vmem:[%s3746_s4 + $0xa0] sm:$0xff]  ;;  %v3244_v62 = vshrl.u32 %v46_v60, 7  ;;  %s3073_s27 = smov 104   ;;  %s3074_s28 = smov 96  }
   0x5   :  { %v2886_v11 = vpack.c.bf16 %v110_v9, %v109_v8  ;;  %v94_v13 = vld [vmem:[%s3746_s4 + $0x18] sm:$0xff]  ;;  %2883 = vmatprep.subr.bf16.mxu0 %v2882_v6  ;;  %v112_v15 = vld [vmem:[%s3746_s4 + $0xa8] sm:$0xff]  ;;  %v95_v18 = vld [vmem:[%s3746_s4 + $0x20] sm:$0xff]  ;;  %s3076_s29 = smov 64   ;;  %s3077_s17 = smov 8   ;;  %vm1017_vm6 = vcmask 130048  }
   0x6   :  { %2885 = vmatpush3.bf16.msra.mxu0 %v2884_v10  ;;  %v2888_v16 = vpack.c.bf16 %v94_v13, %v93_v12  ;;  %v2890_v17 = vpack.c.bf16 %v112_v15, %v111_v14  ;;  %v96_v19 = vld [vmem:[%s3746_s4 + $0x28] sm:$0xff]  ;;  %v113_v28 = vld [vmem:[%s3746_s4 + $0xb0] sm:$0xff]  ;;  %v114_v29 = vld [vmem:[%s3746_s4 + $0xb8] sm:$0xff]  ;;  %v3247_v63 = vsub.s32 0, %v3244_v62  ;;  %v3256_v2 = vsub.s32 1, %v3244_v62  ;;  %s3078_s18 = smov 16  }
   0x7   :  { %2887 = vmatprep.subr.bf16.mxu0 %v2886_v11  ;;  %v2892_v20 = vpack.c.bf16 %v96_v19, %v95_v18  ;;  %v2894_v30 = vpack.c.bf16 %v114_v29, %v113_v28  ;;  %v97_v31 = vld [vmem:[%s3746_s4 + $0x30] sm:$0xff]  ;;  %v98_v32 = vld [vmem:[%s3746_s4 + $0x38] sm:$0xff]  ;;  %v115_v34 = vld [vmem:[%s3746_s4 + $0xc0] sm:$0xff]  ;;  %v3263_v14 = vsub.s32 5, %v3244_v62  ;;  %s3079_s19 = smov 24   ;;  %vm1019_vm7 = vcmask 195584  }
   0x8   :  { %v2896_v33 = vpack.c.bf16 %v98_v32, %v97_v31  ;;  %v116_v35 = vld [vmem:[%s3746_s4 + $0xc8] sm:$0xff]  ;;  %v99_v37 = vld [vmem:[%s3746_s4 + $0x40] sm:$0xff]  ;;  %v117_v39 = vld [vmem:[%s3746_s4 + $0xd0] sm:$0xff]  ;;  %v3272_v32 = vsub.s32 3, %v3244_v62  ;;  %vm1225_vm8 = vcmask 523264  }
   0x9   :  { %v2898_v36 = vpack.c.bf16 %v116_v35, %v115_v34  ;;  %v100_v38 = vld [vmem:[%s3746_s4 + $0x48] sm:$0xff]  ;;  %v118_v41 = vld [vmem:[%s3746_s4 + $0xd8] sm:$0xff]  ;;  %v101_v42 = vld [vmem:[%s3746_s4 + $0x50] sm:$0xff]  ;;  %v3278_v34 = vsub.s32 6, %v3244_v62 }
   0xa   :  { %2889 = vmatpush3.bf16.msra.mxu0 %v2888_v16  ;;  %v2900_v40 = vpack.c.bf16 %v100_v38, %v99_v37  ;;  %v102_v43 = vld [vmem:[%s3746_s4 + $0x58] sm:$0xff]  ;;  %v2902_v44 = vpack.c.bf16 %v118_v41, %v117_v39  ;;  %v119_v45 = vld [vmem:[%s3746_s4 + $0xe0] sm:$0xff]  ;;  %v120_v46 = vld [vmem:[%s3746_s4 + $0xe8] sm:$0xff] }
   0xb   :  { %2891 = vmatprep.subr.bf16.mxu0 %v2890_v17  ;;  %v2904_v47 = vpack.c.bf16 %v102_v43, %v101_v42  ;;  %v2906_v48 = vpack.c.bf16 %v120_v46, %v119_v45  ;;  %v103_v49 = vld [vmem:[%s3746_s4 + $0x60] sm:$0xff]  ;;  %v104_v50 = vld [vmem:[%s3746_s4 + $0x68] sm:$0xff]  ;;  %v121_v51 = vld [vmem:[%s3746_s4 + $0xf0] sm:$0xff] }
   0xc   :  { %v122_v52 = vld [vmem:[%s3746_s4 + $0xf8] sm:$0xff]  ;;  %v2908_v53 = vpack.c.bf16 %v104_v50, %v103_v49  ;;  %v105_v55 = vld [vmem:[%s3746_s4 + $0x70] sm:$0xff] }
   0xd   :  { %v2910_v54 = vpack.c.bf16 %v122_v52, %v121_v51  ;;  %v106_v56 = vld [vmem:[%s3746_s4 + $0x78] sm:$0xff] }
   0xe   :  { %2893 = vmatpush3.bf16.msra.mxu0 %v2892_v20  ;;  %v2912_v57 = vpack.c.bf16 %v106_v56, %v105_v55  ;;  %v261_v55 = vld [vmem:[%s3748_s6 + $0x10] sm:$0xff]  ;;  %v3068_v56 = vmov 0.0|0.0  }
   0xf   :  { %2895 = vmatprep.subr.bf16.mxu0 %v2894_v30  ;;  %2914 = vmatprep.subr.bf16.mxu1 %v3068_v56 }
  0x12   :  { %2897 = vmatpush3.bf16.msra.mxu0 %v2896_v33  ;;  %v3275_v33 = vsub.s32 4, %v3244_v62 }
  0x13   :  { %2899 = vmatprep.subr.bf16.mxu0 %v2898_v36 }
  0x16   :  { %2901 = vmatpush3.bf16.msra.mxu0 %v2900_v40  ;;  %v42_v40 = vld [vmem:[%s3744_s2] sm:$0xff] }
  0x17   :  { %2903 = vmatprep.subr.bf16.mxu0 %v2902_v44 }
  0x1a   :  { %2905 = vmatpush3.bf16.msra.mxu0 %v2904_v47 }
  0x1b   :  { %2907 = vmatprep.subr.bf16.mxu0 %v2906_v48 }
  0x1e   :  { %2909 = vmatpush3.bf16.msra.mxu0 %v2908_v53  ;;  %v259_v53 = vld [vmem:[%s3748_s6] sm:$0xff] }
  0x1f   :  { %2911 = vmatprep.subr.bf16.mxu0 %v2910_v54  ;;  %v260_v54 = vld [vmem:[%s3748_s6 + $0x8] sm:$0xff] }
  0x22   :  { %2913 = vmatpush3.bf16.msra.mxu0 %v2912_v57  ;;  %v2915_v57 = vpack.c.bf16 %v260_v54, %v259_v53 }
  0x23   :  { %2920 = vmatprep.subr.bf16.mxu0 %v3068_v56 }
  0x24   :  { %2916 = vmatpush3.bf16.msra.mxu1 %v2915_v57 }
  0x25   :  { %2917 = vmatprep.subr.bf16.mxu1 %v3068_v56 }
  0x91   :  { %v56_v21 = vpop.xlane.xlu0 %55 }
  0x92   :  { %v58_v22 = vmul.f32 0.00390625, %v56_v21  ;;  %v41_v21 = vld [vmem:[%s3743_s1] sm:$0xff] }
  0x93   :  { %vm228_vm1 = vcmp.gt.f32.partialorder %v41_v21, 0.5  ;;  %v49_v21 = vand.u32 127, %v46_v60 }
  0x94   :  { %v59_v23 = vsub.f32 %v39_v0, %v58_v22  ;;  %v60_v24 = vsub.f32 %v40_v1, %v58_v22  ;;  %v44_v0 = vld [vmem:[%s3745_s3 + $0x8] sm:$0xff]  ;;  %v43_v1 = vld [vmem:[%s3745_s3] sm:$0xff]  ;;  %v3067_v22 = vmov 0  }
  0x95   :  { %v78_v3 = vrot.slane %v44_v0, %v3247_v63  ;;  %v74_v4 = vrot.slane %v43_v1, %v3247_v63  ;;  %v88_v7 = vrot.slane %v44_v0, %v3256_v2  ;;  %v84_v9 = vrot.slane %v43_v1, %v3256_v2  ;;  %2998 = vset.pattern.permute.xlu0 %v3067_v22 }
  0x96   :  { %v61_v25 = vmul.f32 %v59_v23, %v59_v23  ;;  %v62_v26 = vmul.f32 %v60_v24, %v60_v24  ;;  %v126_v16 = vrot.slane %v43_v1, %v3263_v14  ;;  %2999 = vset.pattern.permute.xlu1 %v3067_v22  ;;  %v215_v35 = vrot.slane %v43_v1, %v3272_v32 }
  0x97   :  { %v220_v38 = vrot.slane %v43_v1, %v3275_v33  ;;  %v226_v39 = vrot.slane %v43_v1, %v3278_v34 }
  0x98   :  { %v63_v27 = vadd.f32 %v62_v26, %v61_v25 }
  0x99   :  { %v227_v44 = vadd.f32 %v226_v39, %v42_v40 }
  0x9a   :  { %64 = vadd.xlane.f32.xlu0 %v63_v27 }
 0x127   :  { %v65_v58 = vpop.xlane.xlu0 %64 }
 0x128   :  { %v66_v59 = vmul.f32 0.00390625, %v65_v58  ;;  %v262_v58 = vld [vmem:[%s3748_s6 + $0x18] sm:$0xff] }
 0x12a   :  { %v67_v61 = vadd.f32 1e-05, %v66_v59  ;;  %v3070_v59 = vmov 0.0  }
 0x12b   :  { %2706 = vmatprep.mubr.msk.f32.mxu1 %vm3069_vm3, %v3070_v59 }
 0x12c   :  { %3000 = vrsqrt.f32 %v67_v61  ;;  %v2918_v61 = vpack.c.bf16 %v262_v58, %v261_v55 }
 0x12e   :  { %2919 = vmatpush3.bf16.msra.mxu1 %v2918_v61 }
 0x12f   :  { %2709 = vmatprep.subr.mxu1 %v3070_v59 }
 0x136   :  { %v3001_v5 = vpop.eup %3000 }
 0x137   :  { %v70_v6 = vmul.f32 %v3001_v5, %v60_v24  ;;  %v69_v8 = vmul.f32 %v3001_v5, %v59_v23  ;;  %v229_v23 = vsel %vm228_vm1, 1, %v3067_v22  ;;  %v50_v22 = vshra.s32 %v3244_v62, 2 }
 0x138   :  { %231 = vperm.xlu0 %2998, %v229_v23   ;;  %v51_v23 = vshra.s32 %v49_v21, 2 }
 0x139   :  { %v80_v10 = vmul.f32 %v78_v3, %v70_v6  ;;  %v79_v11 = vmul.f32 %v74_v4, %v69_v8  ;;  %v3315_v4 = vld [vmem:[%s3752_s10] sm:$0x7f] }
 0x13a   :  { %v252_v5 = vrot.slane %v3315_v4, %v3247_v63  ;;  %v257_v8 = vrot.slane %v3315_v4, %v3256_v2  ;;  %vm52_vm5 = vcmp.eq.s32.totalorder %v50_v22, %v51_v23 }
 0x13b   :  { %v90_v12 = vadd.f32 %v88_v7, %v80_v10  ;;  %v89_v13 = vadd.f32 %v84_v9, %v79_v11 }
 0x13d   :  { %191 = vmatprep.mubr.f32.mxu0 %v90_v12 }
 0x13e   :  { %192 = vmatmul.mubr.f32.vlgmr.msra.gmra.mrb[0].mxu0 %v89_v13 }
 0x13f   :  { %2757 = vmatprep.mubr.msk.f32.mxu0 %vm3069_vm3, %v3070_v59 }
 0x1b7   :  { %v232_v41 = vpop.permute.xlu0 %231 }
 0x1b8   :  { %vm233_vm2 = vcmp.eq.s32.totalorder %v232_v41, 1 }
 0x211   :  { %v2615_v15 = vpop.f32.mrb[0].mxu0 }
 0x212   :  { %v2616_v17 = vpop.f32.mrb[1].mxu0 }
 0x213   :  { %v2617_v18 = vadd.f32 %v2616_v17, %v2615_v15 }
 0x215   :  { %v194_v19 = vadd.f32 %v2617_v18, %v126_v16 }
 0x217   :  { %v198_v20 = vsel %vm197_vm0, %v194_v19, 0.0 }
 0x218   :  { %199 = vadd.xlane.f32.xlu1 %v198_v20 }
 0x2a5   :  { %v200_v24 = vpop.xlane.xlu1 %199 }
 0x2a6   :  { %v202_v25 = vmul.f32 0.03125, %v200_v24 }
 0x2a8   :  { %v203_v26 = vsub.f32 %v194_v19, %v202_v25  ;;  %v3075_v25 = vmov -1e+30  }
 0x2aa   :  { %v204_v27 = vmul.f32 %v203_v26, %v203_v26 }
 0x2ac   :  { %v205_v28 = vsel %vm197_vm0, %v204_v27, 0.0 }
 0x2ad   :  { %206 = vadd.xlane.f32.xlu1 %v205_v28 }
 0x33a   :  { %v207_v29 = vpop.xlane.xlu1 %206 }
 0x33b   :  { %v208_v30 = vmul.f32 0.03125, %v207_v29 }
 0x33d   :  { %v209_v31 = vadd.f32 1e-05, %v208_v30 }
 0x33f   :  { %3002 = vrsqrt.f32 %v209_v31 }
 0x349   :  { %v3003_v36 = vpop.eup %3002 }
 0x34a   :  { %v211_v37 = vmul.f32 %v3003_v36, %v203_v26  ;;  %v3368_v26 = vsel %vm52_vm5, 0.0, %v3075_v25 }
 0x34c   :  { %v216_v42 = vmul.f32 %v215_v35, %v211_v37 }
 0x34e   :  { %v221_v43 = vadd.f32 %v220_v38, %v216_v42 }
 0x350   :  { %v222_v45 = vadd.f32 %v221_v43, %v42_v40 }
 0x352   :  { %v3286_v46 = vsel %vm233_vm2, %v227_v44, %v222_v45 }
 0x353   :  { %v236_v47 = vsel %vm197_vm0, %v3286_v46, 0.0 }
 0x354   :  { %237 = vadd.xlane.f32.xlu1 %v236_v47 }
 0x3e1   :  { %v238_v48 = vpop.xlane.xlu1 %237 }
 0x3e2   :  { %v239_v49 = vmul.f32 0.03125, %v238_v48 }
 0x3e4   :  { %v240_v50 = vsub.f32 %v3286_v46, %v239_v49 }
 0x3e6   :  { %v241_v51 = vmul.f32 %v240_v50, %v240_v50 }
 0x3e8   :  { %v242_v52 = vsel %vm197_vm0, %v241_v51, 0.0 }
 0x3e9   :  { %243 = vadd.xlane.f32.xlu1 %v242_v52 }
 0x476   :  { %v244_v0 = vpop.xlane.xlu1 %243 }
 0x477   :  { %v245_v1 = vmul.f32 0.03125, %v244_v0 }
 0x479   :  { %v246_v3 = vadd.f32 1e-05, %v245_v1 }
 0x47b   :  { %3004 = vrsqrt.f32 %v246_v3 }
 0x485   :  { %v3005_v6 = vpop.eup %3004 }
 0x486   :  { %v248_v7 = vmul.f32 %v3005_v6, %v240_v50 }
 0x488   :  { %v253_v9 = vmul.f32 %v252_v5, %v248_v7 }
 0x48a   :  { %v258_v10 = vadd.f32 %v257_v8, %v253_v9 }
 0x48c   :  { %2707 = vmatmul.mubr.msk.f32.vlgmr.msra.gmra.mrb[0].mxu1 %vm197_vm0, %v258_v10 }
 0x48d   :  { %2711 = vmatprep.mubr.msk.f32.mxu1 %vm3069_vm3, %v3070_v59 }
 0x55f   :  { %v3324_v11 = vpop.f32.mrb[0].mxu1 }
 0x560   :  { %337 = vrot.lane.b32.xlu1 %v3324_v11, %s3071_s25  ;;  %v2708_v12 = vpop.f32.mrb[1].mxu1 }
 0x564   :  { %339 = vrot.lane.b32.xlu1 %v3324_v11, %s3072_s26 }
 0x568   :  { %341 = vrot.lane.b32.xlu1 %v3324_v11, %s3073_s27 }
 0x56c   :  { %343 = vrot.lane.b32.xlu1 %v3324_v11, %s3074_s28 }
 0x5d2   :  { %v338_v13 = vpop.permute.xlu1 %337 }
 0x5d3   :  { %420 = vrot.lane.b32.xlu1 %v338_v13, %s3074_s28 }
 0x5d6   :  { %v3335_v15 = vpop.permute.xlu1 %339 }
 0x5d7   :  { %496 = vrot.lane.b32.xlu1 %v3335_v15, %s3074_s28 }
 0x5da   :  { %v3339_v16 = vpop.permute.xlu1 %341 }
 0x5db   :  { %572 = vrot.lane.b32.xlu0 %v3339_v16, %s3074_s28 }
 0x5de   :  { %v344_v17 = vpop.permute.xlu1 %343 }
 0x5df   :  { %2710 = vmatpush3.xpose.msk.msra.mxu1 %vm345_vm4, %v344_v17 }
 0x5e0   :  { %2714 = vmatprep.subr.mxu1 %v3070_v59 }
 0x5e2   :  { %2712 = vmatmul.mubr.msk.f32.vlgmr.msra.gmra.mrb[2].mxu1 %vm345_vm4, %v3324_v11 }
 0x5e3   :  { %2716 = vmatprep.mubr.msk.f32.mxu1 %vm3069_vm3, %v3070_v59 }
 0x645   :  { %v421_v18 = vpop.permute.xlu1 %420 }
 0x646   :  { %2715 = vmatpush3.xpose.msk.msra.mxu1 %vm345_vm4, %v421_v18 }
 0x647   :  { %2719 = vmatprep.subr.mxu1 %v3070_v59 }
 0x649   :  { %2717 = vmatmul.mubr.msk.f32.vlgmr.msra.gmra.mrb[4].mxu1 %vm345_vm4, %v338_v13  ;;  %v497_v19 = vpop.permute.xlu1 %496 }
 0x64a   :  { %2720 = vmatpush3.xpose.msk.msra.mxu1 %vm345_vm4, %v497_v19  ;;  %2721 = vmatprep.mubr.msk.f32.mxu1 %vm3069_vm3, %v3070_v59 }
 0x64b   :  { %2724 = vmatprep.subr.mxu1 %v3070_v59 }
 0x64d   :  { %v573_v20 = vpop.permute.xlu0 %572  ;;  %2722 = vmatmul.mubr.msk.f32.vlgmr.msra.gmra.mrb[6].mxu1 %vm345_vm4, %v3335_v15 }
 0x64e   :  { %2725 = vmatpush3.xpose.msk.msra.mxu1 %vm345_vm4, %v573_v20  ;;  %2726 = vmatprep.mubr.msk.f32.mxu1 %vm3069_vm3, %v3070_v59 }
 0x64f   :  { %2729 = vmatprep.subr.mxu1 %v3070_v59 }
 0x651   :  { %2727 = vmatmul.mubr.msk.f32.vlgmr.msra.gmra.mrb[8].mxu1 %vm345_vm4, %v3339_v16 }
 0x652   :  { %2731 = vmatprep.mubr.msk.f32.mxu1 %vm3069_vm3, %v3070_v59 }
 0x6b5   :  { %v416_v24 = vpop.f32.mrb[2].mxu1 }
 0x6b6   :  { %v648_v27 = vmul.f32 0.35355338, %v416_v24  ;;  %v2713_v28 = vpop.f32.mrb[3].mxu1 }
 0x6b8   :  { %v652_v29 = vadd.f32 %v648_v27, %v3368_v26 }
 0x6ba   :  { %v656_v30 = vsel %vm345_vm4, %v652_v29, -inf }
 0x6bb   :  { %657 = vmax.xlane.f32.xlu1 %v656_v30 }
 0x71c   :  { %v492_v31 = vpop.f32.mrb[4].mxu1 }
 0x71d   :  { %v649_v35 = vmul.f32 0.35355338, %v492_v31  ;;  %v2718_v36 = vpop.f32.mrb[5].mxu1 }
 0x71e   :  { %v1022_v36 = vld [vmem:[%s3749_s7 + $0x8] sm:$0xff] }
 0x71f   :  { %v653_v60 = vadd.f32 %v649_v35, %v3368_v26  ;;  %v1021_v35 = vld [vmem:[%s3749_s7] sm:$0xff] }
 0x720   :  { %v568_v37 = vpop.f32.mrb[6].mxu1 }
 0x721   :  { %v650_v38 = vmul.f32 0.35355338, %v568_v37  ;;  %v2723_v39 = vpop.f32.mrb[7].mxu1  ;;  %v659_v40 = vsel %vm345_vm4, %v653_v60, -inf  ;;  %v1023_v37 = vld [vmem:[%s3749_s7 + $0x10] sm:$0xff] }
 0x722   :  { %660 = vmax.xlane.f32.xlu0 %v659_v40 }
 0x723   :  { %v654_v41 = vadd.f32 %v650_v38, %v3368_v26  ;;  %v1024_v38 = vld [vmem:[%s3749_s7 + $0x18] sm:$0xff] }
 0x724   :  { %v644_v42 = vpop.f32.mrb[8].mxu1  ;;  %v2924_v39 = vpack.c.bf16 %v1024_v38, %v1023_v37  ;;  %v1134_v38 = vrot.slane %v3315_v4, %v3278_v34 }
 0x725   :  { %v651_v43 = vmul.f32 0.35355338, %v644_v42  ;;  %v2728_v44 = vpop.f32.mrb[9].mxu1  ;;  %v662_v45 = vsel %vm345_vm4, %v654_v41, -inf }
 0x726   :  { %663 = vmax.xlane.f32.xlu0 %v662_v45 }
 0x727   :  { %v655_v47 = vadd.f32 %v651_v43, %v3368_v26 }
 0x729   :  { %v665_v48 = vsel %vm345_vm4, %v655_v47, -inf }
 0x72a   :  { %666 = vmax.xlane.f32.xlu1 %v665_v48 }
 0x73b   :  { %776 = vrot.lane.b32.xlu1 %v338_v13, %s3076_s29 }
 0x748   :  { %v658_v49 = vpop.xlane.xlu1 %657 }
 0x749   :  { %v668_v50 = vsub.f32 %v652_v29, %v658_v49 }
 0x74b   :  { %v672_v51 = vmul.f32 1.442695, %v668_v50 }
 0x74d   :  { %3006 = vpow2.f32 %v672_v51 }
 0x757   :  { %v3007_v52 = vpop.eup %3006 }
 0x758   :  { %v680_v53 = vsel %vm345_vm4, %v3007_v52, 0.0 }
 0x759   :  { %681 = vadd.xlane.f32.xlu0 %v680_v53  ;;  %v1102_v53 = vrot.slane %v3315_v4, %v3275_v33 }
 0x76f   :  { %700 = vrot.lane.b32.xlu0 %v3324_v11, %s3076_s29 }
 0x7af   :  { %v661_v54 = vpop.xlane.xlu0 %660 }
 0x7b0   :  { %v669_v55 = vsub.f32 %v653_v60, %v661_v54  ;;  %v2921_v60 = vpack.c.bf16 %v1022_v36, %v1021_v35  ;;  %v1223_v36 = vld [vmem:[%s3751_s9 + $0x30] sm:$0xff] }
 0x7b2   :  { %v674_v57 = vmul.f32 1.442695, %v669_v55  ;;  %2922 = vmatpush3.bf16.msra.mxu0 %v2921_v60  ;;  %v1224_v60 = vld [vmem:[%s3751_s9 + $0x38] sm:$0xff] }
 0x7b3   :  { %v664_v58 = vpop.xlane.xlu0 %663  ;;  %2923 = vmatprep.subr.bf16.mxu0 %v3068_v56  ;;  %v2942_v37 = vpack.c.bf16 %v1224_v60, %v1223_v36 }
 0x7b4   :  { %3008 = vpow2.f32 %v674_v57  ;;  %v670_v61 = vsub.f32 %v654_v41, %v664_v58 }
 0x7b6   :  { %v676_v0 = vmul.f32 1.442695, %v670_v61  ;;  %2925 = vmatpush3.bf16.msra.mxu0 %v2924_v39 }
 0x7b7   :  { %v667_v1 = vpop.xlane.xlu1 %666  ;;  %2932 = vmatprep.subr.bf16.mxu0 %v3068_v56 }
 0x7b8   :  { %3010 = vpow2.f32 %v676_v0  ;;  %v671_v3 = vsub.f32 %v655_v47, %v667_v1 }
 0x7ba   :  { %v678_v5 = vmul.f32 1.442695, %v671_v3 }
 0x7bb   :  { %v777_v19 = vpop.permute.xlu1 %776 }
 0x7bc   :  { %3012 = vpow2.f32 %v678_v5 }
 0x7be   :  { %v3009_v6 = vpop.eup %3008 }
 0x7bf   :  { %v683_v7 = vsel %vm345_vm4, %v3009_v6, 0.0 }
 0x7c0   :  { %684 = vadd.xlane.f32.xlu1 %v683_v7  ;;  %v1127_v7 = vld [vmem:[%s3750_s8] sm:$0xff] }
 0x7c2   :  { %v3011_v8 = vpop.eup %3010 }
 0x7c3   :  { %v686_v9 = vsel %vm345_vm4, %v3011_v8, 0.0 }
 0x7c4   :  { %687 = vadd.xlane.f32.xlu0 %v686_v9  ;;  %v1129_v9 = vld [vmem:[%s3750_s8 + $0x10] sm:$0xff] }
 0x7c6   :  { %v3013_v10 = vpop.eup %3012 }
 0x7c7   :  { %v689_v11 = vsel %vm345_vm4, %v3013_v10, 0.0 }
 0x7c8   :  { %690 = vadd.xlane.f32.xlu1 %v689_v11 }
 0x7d9   :  { %852 = vrot.lane.b32.xlu1 %v3335_v15, %s3076_s29 }
 0x7da   :  { %928 = vrot.lane.b32.xlu0 %v3339_v16, %s3076_s29 }
 0x7e6   :  { %v682_v12 = vpop.xlane.xlu0 %681 }
 0x7e7   :  { %3014 = vrcp.f32 %v682_v12 }
 0x7ea   :  { %v701_v13 = vpop.permute.xlu0 %700 }
 0x7eb   :  { %2730 = vmatpush3.msra.mxu1 %v701_v13 }
 0x7ec   :  { %2734 = vmatprep.subr.mxu1 %v3070_v59 }
 0x7f1   :  { %v3015_v17 = vpop.eup %3014 }
 0x7f2   :  { %v696_v18 = vmul.f32 %v3015_v17, %v3007_v52 }
 0x7f4   :  { %2732 = vmatmul.mubr.msk.f32.vlgmr.msra.gmra.mrb[10].mxu1 %vm345_vm4, %v696_v18  ;;  %v3452_v18 = vsub.s32 2, %v3244_v62 }
 0x7f5   :  { %2735 = vmatpush3.msra.mxu1 %v777_v19  ;;  %2736 = vmatprep.mubr.msk.f32.mxu1 %vm3069_vm3, %v3070_v59 }
 0x7f6   :  { %2739 = vmatprep.subr.mxu1 %v3070_v59  ;;  %v1120_v19 = vrot.slane %v3315_v4, %v3452_v18 }
 0x84d   :  { %v685_v15 = vpop.xlane.xlu1 %684 }
 0x84e   :  { %3016 = vrcp.f32 %v685_v15 }
 0x851   :  { %v688_v16 = vpop.xlane.xlu0 %687 }
 0x852   :  { %3018 = vrcp.f32 %v688_v16 }
 0x855   :  { %v691_v20 = vpop.xlane.xlu1 %690  ;;  %v929_v27 = vpop.permute.xlu0 %928 }
 0x856   :  { %3020 = vrcp.f32 %v691_v20  ;;  %v1125_v20 = vrot.slane %v3315_v4, %v3272_v32 }
 0x858   :  { %v3017_v21 = vpop.eup %3016 }
 0x859   :  { %v697_v22 = vmul.f32 %v3017_v21, %v3009_v6  ;;  %v853_v23 = vpop.permute.xlu1 %852 }
 0x85b   :  { %2737 = vmatmul.mubr.msk.f32.vlgmr.msra.gmra.mrb[12].mxu1 %vm345_vm4, %v697_v22 }
 0x85c   :  { %v3019_v24 = vpop.eup %3018  ;;  %2740 = vmatpush3.msra.mxu1 %v853_v23  ;;  %2741 = vmatprep.mubr.msk.f32.mxu1 %vm3069_vm3, %v3070_v59  ;;  %v1217_v23 = vld [vmem:[%s3751_s9] sm:$0xff] }
 0x85d   :  { %v698_v25 = vmul.f32 %v3019_v24, %v3011_v8  ;;  %2744 = vmatprep.subr.mxu1 %v3070_v59  ;;  %v1218_v24 = vld [vmem:[%s3751_s9 + $0x8] sm:$0xff] }
 0x85f   :  { %2742 = vmatmul.mubr.msk.f32.vlgmr.msra.gmra.mrb[14].mxu1 %vm345_vm4, %v698_v25  ;;  %v2933_v25 = vpack.c.bf16 %v1218_v24, %v1217_v23 }
 0x860   :  { %v3021_v28 = vpop.eup %3020  ;;  %2745 = vmatpush3.msra.mxu1 %v929_v27  ;;  %2746 = vmatprep.mubr.msk.f32.mxu1 %vm3069_vm3, %v3070_v59  ;;  %v1219_v27 = vld [vmem:[%s3751_s9 + $0x10] sm:$0xff] }
 0x861   :  { %v699_v29 = vmul.f32 %v3021_v28, %v3013_v10  ;;  %2926 = vmatprep.subr.bf16.mxu1 %v3068_v56  ;;  %v1130_v10 = vld [vmem:[%s3750_s8 + $0x18] sm:$0xff] }
 0x862   :  { %v2930_v11 = vpack.c.bf16 %v1130_v10, %v1129_v9  ;;  %v1220_v28 = vld [vmem:[%s3751_s9 + $0x18] sm:$0xff] }
 0x863   :  { %2747 = vmatmul.mubr.msk.f32.vlgmr.msra.gmra.mrb[16].mxu1 %vm345_vm4, %v699_v29  ;;  %v2936_v29 = vpack.c.bf16 %v1220_v28, %v1219_v27 }
 0x864   :  { %2768 = vmatprep.mubr.msk.f32.mxu1 %vm3069_vm3, %v3070_v59 }
 0x8c7   :  { %v772_v30 = vpop.f32.mrb[10].mxu1 }
 0x8c8   :  { %v2733_v31 = vpop.f32.mrb[11].mxu1 }
 0x8c9   :  { %v1222_v31 = vld [vmem:[%s3751_s9 + $0x28] sm:$0xff] }
 0x92e   :  { %v848_v40 = vpop.f32.mrb[12].mxu1 }
 0x92f   :  { %1005 = vrot.lane.b32.xlu1 %v848_v40, %s3077_s17  ;;  %v2738_v41 = vpop.f32.mrb[13].mxu1 }
 0x932   :  { %v924_v42 = vpop.f32.mrb[14].mxu1 }
 0x933   :  { %1009 = vrot.lane.b32.xlu0 %v924_v42, %s3078_s18  ;;  %v2743_v43 = vpop.f32.mrb[15].mxu1 }
 0x936   :  { %v1000_v44 = vpop.f32.mrb[16].mxu1 }
 0x937   :  { %1013 = vrot.lane.b32.xlu1 %v1000_v44, %s3079_s19  ;;  %v2748_v45 = vpop.f32.mrb[17].mxu1 }
 0x9a1   :  { %v1006_v47 = vpop.permute.xlu1 %1005 }
 0x9a2   :  { %v1016_v49 = vsel %vm345_vm4, %v772_v30, %v1006_v47  ;;  %v1221_v30 = vld [vmem:[%s3751_s9 + $0x20] sm:$0xff] }
 0x9a3   :  { %v2939_v35 = vpack.c.bf16 %v1222_v31, %v1221_v30 }
 0x9a5   :  { %v1010_v48 = vpop.permute.xlu0 %1009 }
 0x9a6   :  { %v1018_v50 = vsel %vm1017_vm6, %v1016_v49, %v1010_v48 }
 0x9a9   :  { %v1014_v51 = vpop.permute.xlu1 %1013 }
 0x9aa   :  { %v1020_v52 = vsel %vm1019_vm7, %v1018_v50, %v1014_v51 }
 0x9ab   :  { %2758 = vmatmul.mubr.msk.f32.vlgmr.msra.gmra.mrb[2].mxu0 %vm197_vm0, %v1020_v52  ;;  %v1303_v52 = vrot.slane %v3315_v4, %v3263_v14  ;;  %v2545_v4 = vld [vmem:[%s3748_s6 + $0x20] sm:$0xff] }
 0x9ac   :  { %2787 = vmatprep.mubr.msk.f32.mxu0 %vm3069_vm3, %v3070_v59  ;;  %2934 = vmatpush3.bf16.msra.mxu0 %v2933_v25 }
 0x9ad   :  { %2935 = vmatprep.subr.bf16.mxu0 %v3068_v56 }
 0x9b0   :  { %2937 = vmatpush3.bf16.msra.mxu0 %v2936_v29 }
 0x9b1   :  { %2938 = vmatprep.subr.bf16.mxu0 %v3068_v56 }
 0x9b4   :  { %2940 = vmatpush3.bf16.msra.mxu0 %v2939_v35 }
 0x9b5   :  { %2941 = vmatprep.subr.bf16.mxu0 %v3068_v56 }
 0x9b8   :  { %2943 = vmatpush3.bf16.msra.mxu0 %v2942_v37 }
 0x9b9   :  { %2811 = vmatprep.subr.mxu0 %v3070_v59 }
 0xa7e   :  { %v1094_v54 = vpop.f32.mrb[2].mxu0 }
 0xa7f   :  { %v1098_v55 = vadd.f32 %v1094_v54, %v3286_v46  ;;  %v2759_v57 = vpop.f32.mrb[3].mxu0  ;;  %v1128_v46 = vld [vmem:[%s3750_s8 + $0x8] sm:$0xff] }
 0xa80   :  { %v2927_v8 = vpack.c.bf16 %v1128_v46, %v1127_v7  ;;  %v2547_v46 = vld [vmem:[%s3748_s6 + $0x30] sm:$0xff] }
 0xa81   :  { %v3431_v58 = vadd.f32 %v1102_v53, %v1098_v55 }
 0xa82   :  { %2928 = vmatpush3.bf16.msra.mxu1 %v2927_v8  ;;  %v2548_v8 = vld [vmem:[%s3748_s6 + $0x38] sm:$0xff] }
 0xa83   :  { %v1104_v61 = vsel %vm197_vm0, %v3431_v58, 0.0  ;;  %2929 = vmatprep.subr.bf16.mxu1 %v3068_v56  ;;  %v2948_v9 = vpack.c.bf16 %v2548_v8, %v2547_v46 }
 0xa84   :  { %1105 = vadd.xlane.f32.xlu0 %v1104_v61 }
 0xa86   :  { %2931 = vmatpush3.bf16.msra.mxu1 %v2930_v11 }
 0xa87   :  { %2944 = vmatprep.subr.bf16.mxu1 %v3068_v56 }
 0xb11   :  { %v1106_v0 = vpop.xlane.xlu0 %1105 }
 0xb12   :  { %v1107_v1 = vmul.f32 0.03125, %v1106_v0 }
 0xb14   :  { %v1108_v3 = vsub.f32 %v3431_v58, %v1107_v1 }
 0xb16   :  { %v1109_v5 = vmul.f32 %v1108_v3, %v1108_v3 }
 0xb18   :  { %v1110_v6 = vsel %vm197_vm0, %v1109_v5, 0.0 }
 0xb19   :  { %1111 = vadd.xlane.f32.xlu1 %v1110_v6 }
 0xba6   :  { %v1112_v12 = vpop.xlane.xlu1 %1111 }
 0xba7   :  { %v1113_v13 = vmul.f32 0.03125, %v1112_v12 }
 0xba9   :  { %v1114_v17 = vadd.f32 1e-05, %v1113_v13  ;;  %v3520_v13 = vld [vmem:[%s3752_s10 + $0x8] sm:$0x7f] }
 0xbab   :  { %3022 = vrsqrt.f32 %v1114_v17  ;;  %v1323_v17 = vrot.slane %v3520_v13, %v3247_v63 }
 0xbb5   :  { %v3023_v15 = vpop.eup %3022 }
 0xbb6   :  { %v1116_v16 = vmul.f32 %v3023_v15, %v1108_v3 }
 0xbb8   :  { %v1121_v21 = vmul.f32 %v1120_v19, %v1116_v16  ;;  %v1328_v16 = vrot.slane %v3520_v13, %v3256_v2 }
 0xbba   :  { %v1126_v22 = vadd.f32 %v1125_v20, %v1121_v21 }
 0xbbc   :  { %2769 = vmatmul.mubr.msk.f32.vlgmr.msra.gmra.mrb[18].mxu1 %vm197_vm0, %v1126_v22 }
 0xbbd   :  { %2798 = vmatprep.mubr.msk.f32.mxu1 %vm3069_vm3, %v3070_v59 }
 0xc8f   :  { %v1204_v39 = vpop.f32.mrb[18].mxu1 }
 0xc90   :  { %v1205_v40 = vadd.f32 %v1204_v39, %v1134_v38  ;;  %v2770_v41 = vpop.f32.mrb[19].mxu1 }
 0xc92   :  { %v1208_v42 = vmul.f32 %v1205_v40, %v1205_v40 }
 0xc94   :  { %v1209_v43 = vmul.f32 %v1208_v42, %v1205_v40 }
 0xc96   :  { %v1210_v44 = vmul.f32 0.044715, %v1209_v43 }
 0xc98   :  { %v1211_v45 = vadd.f32 %v1210_v44, %v1205_v40 }
 0xc9a   :  { %v1212_v47 = vmul.f32 0.7978846, %v1211_v45 }
 0xc9c   :  { %3024 = vtanh.f32 %v1212_v47 }
 0xca6   :  { %v3025_v48 = vpop.eup %3024 }
 0xca7   :  { %v1214_v49 = vadd.f32 1.0, %v3025_v48 }
 0xca9   :  { %v1215_v50 = vmul.f32 0.5, %v1214_v49 }
 0xcab   :  { %v1216_v51 = vmul.f32 %v1215_v50, %v1205_v40 }
 0xcad   :  { %2788 = vmatmul.mubr.msk.f32.vlgmr.msra.gmra.mrb[4].mxu0 %vm1225_vm8, %v1216_v51 }
 0xcae   :  { %2813 = vmatprep.mubr.msk.f32.mxu0 %vm3069_vm3, %v3070_v59 }
 0xd80   :  { %v1295_v53 = vpop.f32.mrb[4].mxu0 }
 0xd81   :  { %v1299_v54 = vadd.f32 %v1295_v53, %v3431_v58  ;;  %v2789_v55 = vpop.f32.mrb[5].mxu0  ;;  %v2546_v58 = vld [vmem:[%s3748_s6 + $0x28] sm:$0xff] }
 0xd82   :  { %v2945_v7 = vpack.c.bf16 %v2546_v58, %v2545_v4 }
 0xd83   :  { %v3497_v57 = vadd.f32 %v1303_v52, %v1299_v54 }
 0xd84   :  { %2946 = vmatpush3.bf16.msra.mxu1 %v2945_v7 }
 0xd85   :  { %v1307_v61 = vsel %vm197_vm0, %v3497_v57, 0.0  ;;  %2947 = vmatprep.subr.bf16.mxu1 %v3068_v56 }
 0xd86   :  { %1308 = vadd.xlane.f32.xlu0 %v1307_v61 }
 0xd88   :  { %2949 = vmatpush3.bf16.msra.mxu1 %v2948_v9 }
 0xd89   :  { %2801 = vmatprep.subr.mxu1 %v3070_v59 }
 0xe13   :  { %v1309_v0 = vpop.xlane.xlu0 %1308 }
 0xe14   :  { %v1310_v1 = vmul.f32 0.03125, %v1309_v0 }
 0xe16   :  { %v1311_v3 = vsub.f32 %v3497_v57, %v1310_v1 }
 0xe18   :  { %v1312_v5 = vmul.f32 %v1311_v3, %v1311_v3 }
 0xe1a   :  { %v1313_v6 = vsel %vm197_vm0, %v1312_v5, 0.0 }
 0xe1b   :  { %1314 = vadd.xlane.f32.xlu0 %v1313_v6 }
 0xea8   :  { %v1315_v10 = vpop.xlane.xlu0 %1314 }
 0xea9   :  { %v1316_v11 = vmul.f32 0.03125, %v1315_v10 }
 0xeab   :  { %v1317_v12 = vadd.f32 1e-05, %v1316_v11 }
 0xead   :  { %3026 = vrsqrt.f32 %v1317_v12 }
 0xeb7   :  { %v3027_v19 = vpop.eup %3026 }
 0xeb8   :  { %v1319_v15 = vmul.f32 %v3027_v19, %v1311_v3 }
 0xeba   :  { %v1324_v20 = vmul.f32 %v1323_v17, %v1319_v15 }
 0xebc   :  { %v1329_v21 = vadd.f32 %v1328_v16, %v1324_v20 }
 0xebe   :  { %2799 = vmatmul.mubr.msk.f32.vlgmr.msra.gmra.mrb[20].mxu1 %vm197_vm0, %v1329_v21 }
 0xebf   :  { %2803 = vmatprep.mubr.msk.f32.mxu1 %vm3069_vm3, %v3070_v59 }
 0xf91   :  { %v1404_v22 = vpop.f32.mrb[20].mxu1 }
 0xf92   :  { %1411 = vrot.lane.b32.xlu0 %v1404_v22, %s3072_s26  ;;  %1409 = vrot.lane.b32.xlu1 %v1404_v22, %s3071_s25  ;;  %v2800_v23 = vpop.f32.mrb[21].mxu1 }
 0xf96   :  { %1413 = vrot.lane.b32.xlu1 %v1404_v22, %s3073_s27 }
 0xf9a   :  { %1415 = vrot.lane.b32.xlu1 %v1404_v22, %s3074_s28 }
0x1004   :  { %v3533_v63 = vpop.permute.xlu0 %1411  ;;  %v1410_v2 = vpop.permute.xlu1 %1409 }
0x1005   :  { %1567 = vrot.lane.b32.xlu1 %v3533_v63, %s3074_s28  ;;  %1491 = vrot.lane.b32.xlu0 %v1410_v2, %s3074_s28 }
0x1008   :  { %v3538_v24 = vpop.permute.xlu1 %1413 }
0x1009   :  { %1643 = vrot.lane.b32.xlu0 %v3538_v24, %s3074_s28 }
0x100c   :  { %v1416_v25 = vpop.permute.xlu1 %1415 }
0x100d   :  { %2802 = vmatpush3.xpose.msk.msra.mxu1 %vm345_vm4, %v1416_v25 }
0x100e   :  { %2806 = vmatprep.subr.mxu1 %v3070_v59 }
0x1010   :  { %2804 = vmatmul.mubr.msk.f32.vlgmr.msra.gmra.mrb[22].mxu1 %vm345_vm4, %v1404_v22 }
0x1011   :  { %2808 = vmatprep.mubr.msk.f32.mxu1 %vm3069_vm3, %v3070_v59 }
0x1077   :  { %v1492_v27 = vpop.permute.xlu0 %1491  ;;  %v1568_v28 = vpop.permute.xlu1 %1567 }
0x1078   :  { %2807 = vmatpush3.xpose.msk.msra.mxu1 %vm345_vm4, %v1492_v27  ;;  %2812 = vmatpush3.xpose.msk.msra.mxu0 %vm345_vm4, %v1568_v28 }
0x1079   :  { %2816 = vmatprep.subr.mxu1 %v3070_v59  ;;  %2821 = vmatprep.subr.mxu0 %v3070_v59 }
0x107b   :  { %v1644_v29 = vpop.permute.xlu0 %1643  ;;  %2809 = vmatmul.mubr.msk.f32.vlgmr.msra.gmra.mrb[24].mxu1 %vm345_vm4, %v1410_v2  ;;  %2814 = vmatmul.mubr.msk.f32.vlgmr.msra.gmra.mrb[6].mxu0 %vm345_vm4, %v3533_v63 }
0x107c   :  { %2817 = vmatpush3.xpose.msk.msra.mxu1 %vm345_vm4, %v1644_v29  ;;  %2818 = vmatprep.mubr.msk.f32.mxu1 %vm3069_vm3, %v3070_v59 }
0x107d   :  { %2826 = vmatprep.subr.mxu1 %v3070_v59  ;;  %2823 = vmatprep.mubr.msk.f32.mxu0 %vm3069_vm3, %v3070_v59 }
0x107f   :  { %2819 = vmatmul.mubr.msk.f32.vlgmr.msra.gmra.mrb[26].mxu1 %vm345_vm4, %v3538_v24 }
0x1080   :  { %2828 = vmatprep.mubr.msk.f32.mxu1 %vm3069_vm3, %v3070_v59 }
0x10e3   :  { %v1487_v30 = vpop.f32.mrb[22].mxu1 }
0x10e4   :  { %v1719_v31 = vmul.f32 0.35355338, %v1487_v30  ;;  %v2805_v35 = vpop.f32.mrb[23].mxu1 }
0x10e5   :  { %v2562_v35 = vld [vmem:[%s3749_s7 + $0x20] sm:$0xff] }
0x10e6   :  { %v1723_v36 = vadd.f32 %v1719_v31, %v3368_v26 }
0x10e8   :  { %v1727_v60 = vsel %vm345_vm4, %v1723_v36, -inf }
0x10e9   :  { %1728 = vmax.xlane.f32.xlu1 %v1727_v60 }
0x114e   :  { %v1563_v37 = vpop.f32.mrb[24].mxu1  ;;  %v1639_v38 = vpop.f32.mrb[6].mxu0 }
0x114f   :  { %v1720_v39 = vmul.f32 0.35355338, %v1563_v37  ;;  %v1721_v40 = vmul.f32 0.35355338, %v1639_v38  ;;  %v2810_v41 = vpop.f32.mrb[25].mxu1  ;;  %v2815_v42 = vpop.f32.mrb[7].mxu0 }
0x1151   :  { %v1724_v43 = vadd.f32 %v1720_v39, %v3368_v26  ;;  %v1725_v49 = vadd.f32 %v1721_v40, %v3368_v26  ;;  %v2564_v39 = vld [vmem:[%s3749_s7 + $0x30] sm:$0xff]  ;;  %v2565_v40 = vld [vmem:[%s3749_s7 + $0x38] sm:$0xff] }
0x1152   :  { %v1715_v44 = vpop.f32.mrb[26].mxu1  ;;  %v2954_v41 = vpack.c.bf16 %v2565_v40, %v2564_v39 }
0x1153   :  { %v1722_v45 = vmul.f32 0.35355338, %v1715_v44  ;;  %v2820_v47 = vpop.f32.mrb[27].mxu1  ;;  %v1730_v48 = vsel %vm345_vm4, %v1724_v43, -inf  ;;  %v1733_v51 = vsel %vm345_vm4, %v1725_v49, -inf }
0x1154   :  { %1731 = vmax.xlane.f32.xlu0 %v1730_v48 }
0x1155   :  { %v1726_v50 = vadd.f32 %v1722_v45, %v3368_v26 }
0x1157   :  { %v1736_v52 = vsel %vm345_vm4, %v1726_v50, -inf }
0x1158   :  { %1734 = vmax.xlane.f32.xlu0 %v1733_v51  ;;  %1737 = vmax.xlane.f32.xlu1 %v1736_v52 }
0x1169   :  { %1847 = vrot.lane.b32.xlu1 %v1410_v2, %s3076_s29 }
0x116e   :  { %1771 = vrot.lane.b32.xlu0 %v1404_v22, %s3076_s29 }
0x1176   :  { %v1729_v53 = vpop.xlane.xlu1 %1728 }
0x1177   :  { %v1739_v54 = vsub.f32 %v1723_v36, %v1729_v53  ;;  %v2563_v36 = vld [vmem:[%s3749_s7 + $0x28] sm:$0xff] }
0x1178   :  { %v2951_v60 = vpack.c.bf16 %v2563_v36, %v2562_v35  ;;  %v2205_v36 = vrot.slane %v3520_v13, %v3278_v34 }
0x1179   :  { %v1743_v55 = vmul.f32 1.442695, %v1739_v54 }
0x117b   :  { %3028 = vpow2.f32 %v1743_v55  ;;  %v2172_v55 = vrot.slane %v3520_v13, %v3275_v33  ;;  %v3050_v33 = vld [vmem:[%s3743_s1] sm:$0xff] }
0x1185   :  { %v3029_v61 = vpop.eup %3028 }
0x1186   :  { %v1751_v0 = vsel %vm345_vm4, %v3029_v61, 0.0 }
0x118d   :  { %1752 = vadd.xlane.f32.xlu0 %v1751_v0 }
0x11e1   :  { %v1732_v1 = vpop.xlane.xlu0 %1731 }
0x11e2   :  { %v1740_v26 = vsub.f32 %v1724_v43, %v1732_v1 }
0x11e4   :  { %v1745_v3 = vmul.f32 1.442695, %v1740_v26 }
0x11e5   :  { %v1735_v5 = vpop.xlane.xlu0 %1734  ;;  %v1738_v6 = vpop.xlane.xlu1 %1737 }
0x11e6   :  { %3030 = vpow2.f32 %v1745_v3  ;;  %v1741_v4 = vsub.f32 %v1725_v49, %v1735_v5  ;;  %v1742_v58 = vsub.f32 %v1726_v50, %v1738_v6 }
0x11e8   :  { %v1747_v7 = vmul.f32 1.442695, %v1741_v4  ;;  %v1749_v46 = vmul.f32 1.442695, %v1742_v58 }
0x11e9   :  { %v1772_v8 = vpop.permute.xlu0 %1771  ;;  %v1848_v9 = vpop.permute.xlu1 %1847 }
0x11ea   :  { %3032 = vpow2.f32 %v1747_v7  ;;  %2822 = vmatpush3.msra.mxu0 %v1772_v8  ;;  %2827 = vmatpush3.msra.mxu1 %v1848_v9  ;;  %v2569_v9 = vld [vmem:[%s3750_s8 + $0x30] sm:$0xff] }
0x11eb   :  { %3034 = vpow2.f32 %v1749_v46  ;;  %2831 = vmatprep.subr.mxu0 %v3070_v59  ;;  %2836 = vmatprep.subr.mxu1 %v3070_v59  ;;  %v2568_v46 = vld [vmem:[%s3750_s8 + $0x28] sm:$0xff] }
0x11f0   :  { %v3031_v10 = vpop.eup %3030 }
0x11f1   :  { %v1754_v11 = vsel %vm345_vm4, %v3031_v10, 0.0 }
0x11f2   :  { %1755 = vadd.xlane.f32.xlu1 %v1754_v11 }
0x11f4   :  { %v3033_v12 = vpop.eup %3032 }
0x11f5   :  { %v3035_v17 = vpop.eup %3034  ;;  %v1757_v19 = vsel %vm345_vm4, %v3033_v12, 0.0 }
0x11f6   :  { %1758 = vadd.xlane.f32.xlu0 %v1757_v19  ;;  %v1760_v15 = vsel %vm345_vm4, %v3035_v17, 0.0 }
0x11f7   :  { %1761 = vadd.xlane.f32.xlu1 %v1760_v15  ;;  %v2190_v15 = vrot.slane %v3520_v13, %v3452_v18 }
0x1208   :  { %1923 = vrot.lane.b32.xlu1 %v3533_v63, %s3076_s29 }
0x120c   :  { %1999 = vrot.lane.b32.xlu0 %v3538_v24, %s3076_s29 }
0x121a   :  { %v1753_v16 = vpop.xlane.xlu0 %1752 }
0x121b   :  { %3036 = vrcp.f32 %v1753_v16 }
0x1225   :  { %v3037_v20 = vpop.eup %3036 }
0x1226   :  { %v1767_v21 = vmul.f32 %v3037_v20, %v3029_v61 }
0x1228   :  { %2824 = vmatmul.mubr.msk.f32.vlgmr.msra.gmra.mrb[8].mxu0 %vm345_vm4, %v1767_v21  ;;  %v2195_v21 = vrot.slane %v3520_v13, %v3272_v32  ;;  %v2574_v32 = vld [vmem:[%s3751_s9 + $0x50] sm:$0xff] }
0x1229   :  { %2833 = vmatprep.mubr.msk.f32.mxu0 %vm3069_vm3, %v3070_v59 }
0x127f   :  { %v1756_v22 = vpop.xlane.xlu1 %1755 }
0x1280   :  { %3038 = vrcp.f32 %v1756_v22 }
0x1283   :  { %v1759_v23 = vpop.xlane.xlu0 %1758 }
0x1284   :  { %3040 = vrcp.f32 %v1759_v23  ;;  %v1762_v2 = vpop.xlane.xlu1 %1761 }
0x1285   :  { %3042 = vrcp.f32 %v1762_v2  ;;  %v2572_v2 = vld [vmem:[%s3751_s9 + $0x40] sm:$0xff] }
0x1287   :  { %v2000_v27 = vpop.permute.xlu0 %1999 }
0x1288   :  { %v1924_v25 = vpop.permute.xlu1 %1923 }
0x1289   :  { %2832 = vmatpush3.msra.mxu0 %v1924_v25  ;;  %v2573_v25 = vld [vmem:[%s3751_s9 + $0x48] sm:$0xff] }
0x128a   :  { %v3039_v63 = vpop.eup %3038  ;;  %2950 = vmatprep.subr.bf16.mxu0 %v3068_v56 }
0x128b   :  { %v1768_v24 = vmul.f32 %v3039_v63, %v3031_v10  ;;  %v2570_v10 = vld [vmem:[%s3750_s8 + $0x38] sm:$0xff]  ;;  %v2963_v63 = vpack.c.bf16 %v2573_v25, %v2572_v2 }
0x128c   :  { %v2960_v11 = vpack.c.bf16 %v2570_v10, %v2569_v9  ;;  %v2391_v10 = vsub.s32 7, %v3244_v62  ;;  %v3052_v62 = vld [vmem:[%s3745_s3 + $0x8] sm:$0xff] }
0x128d   :  { %2829 = vmatmul.mubr.msk.f32.vlgmr.msra.gmra.mrb[28].mxu1 %vm345_vm4, %v1768_v24 }
0x128e   :  { %v3041_v28 = vpop.eup %3040  ;;  %2837 = vmatpush3.msra.mxu1 %v2000_v27  ;;  %2838 = vmatprep.mubr.msk.f32.mxu1 %vm3069_vm3, %v3070_v59  ;;  %v2576_v27 = vld [vmem:[%s3751_s9 + $0x60] sm:$0xff] }
0x128f   :  { %v3043_v29 = vpop.eup %3042  ;;  %v1769_v30 = vmul.f32 %v3041_v28, %v3033_v12  ;;  %2956 = vmatprep.subr.bf16.mxu1 %v3068_v56  ;;  %v2577_v28 = vld [vmem:[%s3751_s9 + $0x68] sm:$0xff] }
0x1290   :  { %v1770_v31 = vmul.f32 %v3043_v29, %v3035_v17  ;;  %v2969_v29 = vpack.c.bf16 %v2577_v28, %v2576_v27 }
0x1291   :  { %2834 = vmatmul.mubr.msk.f32.vlgmr.msra.gmra.mrb[10].mxu0 %vm345_vm4, %v1769_v30  ;;  %v2578_v30 = vld [vmem:[%s3751_s9 + $0x70] sm:$0xff] }
0x1292   :  { %2839 = vmatmul.mubr.msk.f32.vlgmr.msra.gmra.mrb[30].mxu1 %vm345_vm4, %v1770_v31  ;;  %2849 = vmatprep.mubr.msk.f32.mxu0 %vm3069_vm3, %v3070_v59  ;;  %v2579_v31 = vld [vmem:[%s3751_s9 + $0x78] sm:$0xff] }
0x1293   :  { %2860 = vmatprep.mubr.msk.f32.mxu1 %vm3069_vm3, %v3070_v59  ;;  %2952 = vmatpush3.bf16.msra.mxu0 %v2951_v60  ;;  %v2972_v35 = vpack.c.bf16 %v2579_v31, %v2578_v30 }
0x1294   :  { %2953 = vmatprep.subr.bf16.mxu0 %v3068_v56 }
0x1297   :  { %2955 = vmatpush3.bf16.msra.mxu0 %v2954_v41 }
0x1298   :  { %2962 = vmatprep.subr.bf16.mxu0 %v3068_v56 }
0x12fb   :  { %v1843_v37 = vpop.f32.mrb[8].mxu0 }
0x12fc   :  { %v2825_v38 = vpop.f32.mrb[9].mxu0 }
0x1360   :  { %v1919_v42 = vpop.f32.mrb[28].mxu1 }
0x1361   :  { %2076 = vrot.lane.b32.xlu1 %v1919_v42, %s3077_s17  ;;  %v2830_v43 = vpop.f32.mrb[29].mxu1 }
0x1364   :  { %v1995_v44 = vpop.f32.mrb[10].mxu0 }
0x1365   :  { %v2071_v45 = vpop.f32.mrb[30].mxu1  ;;  %2080 = vrot.lane.b32.xlu0 %v1995_v44, %s3078_s18  ;;  %v2835_v47 = vpop.f32.mrb[11].mxu0 }
0x1366   :  { %2084 = vrot.lane.b32.xlu1 %v2071_v45, %s3079_s19  ;;  %v2840_v48 = vpop.f32.mrb[31].mxu1 }
0x1367   :  { %v2374_v48 = vrot.slane %v3520_v13, %v3263_v14  ;;  %v2402_v14 = vld [vmem:[%s3747_s5 + $0x18] sm:$0xff] }
0x13d3   :  { %v2077_v49 = vpop.permute.xlu1 %2076 }
0x13d4   :  { %v2087_v50 = vsel %vm345_vm4, %v1843_v37, %v2077_v49 }
0x13d7   :  { %v2081_v51 = vpop.permute.xlu0 %2080 }
0x13d8   :  { %v2088_v52 = vsel %vm1017_vm6, %v2087_v50, %v2081_v51  ;;  %v2085_v53 = vpop.permute.xlu1 %2084 }
0x13d9   :  { %v2089_v54 = vsel %vm1019_vm7, %v2088_v52, %v2085_v53 }
0x13da   :  { %2850 = vmatmul.mubr.msk.f32.vlgmr.msra.gmra.mrb[12].mxu0 %vm197_vm0, %v2089_v54 }
0x13db   :  { %2879 = vmatprep.mubr.msk.f32.mxu0 %vm3069_vm3, %v3070_v59  ;;  %2964 = vmatpush3.bf16.msra.mxu0 %v2963_v63 }
0x13dc   :  { %2965 = vmatprep.subr.bf16.mxu0 %v3068_v56 }
0x14ad   :  { %v2164_v61 = vpop.f32.mrb[12].mxu0 }
0x14ae   :  { %v2168_v0 = vadd.f32 %v2164_v61, %v3497_v57  ;;  %v2851_v1 = vpop.f32.mrb[13].mxu0  ;;  %v2567_v57 = vld [vmem:[%s3750_s8 + $0x20] sm:$0xff] }
0x14af   :  { %v2957_v8 = vpack.c.bf16 %v2568_v46, %v2567_v57  ;;  %v2400_v1 = vld [vmem:[%s3747_s5 + $0x8] sm:$0xff] }
0x14b0   :  { %v3624_v26 = vadd.f32 %v2172_v55, %v2168_v0  ;;  %v2974_v13 = vpack.c.bf16 %v2402_v14, %v2400_v1 }
0x14b1   :  { %2958 = vmatpush3.bf16.msra.mxu1 %v2957_v8 }
0x14b2   :  { %v2174_v3 = vsel %vm197_vm0, %v3624_v26, 0.0  ;;  %2959 = vmatprep.subr.bf16.mxu1 %v3068_v56 }
0x14b3   :  { %2175 = vadd.xlane.f32.xlu0 %v2174_v3  ;;  %v2401_v3 = vld [vmem:[%s3747_s5 + $0x10] sm:$0xff] }
0x14b5   :  { %2961 = vmatpush3.bf16.msra.mxu1 %v2960_v11  ;;  %v3051_v11 = vld [vmem:[%s3745_s3] sm:$0xff] }
0x14b6   :  { %2975 = vmatprep.subr.bf16.mxu1 %v2974_v13 }
0x1540   :  { %v2176_v5 = vpop.xlane.xlu0 %2175 }
0x1541   :  { %v2177_v6 = vmul.f32 0.03125, %v2176_v5 }
0x1543   :  { %v2178_v4 = vsub.f32 %v3624_v26, %v2177_v6  ;;  %v2404_v6 = vld [vmem:[%s3747_s5 + $0x28] sm:$0xff] }
0x1545   :  { %v2179_v58 = vmul.f32 %v2178_v4, %v2178_v4 }
0x1547   :  { %v2180_v7 = vsel %vm197_vm0, %v2179_v58, 0.0  ;;  %v2403_v58 = vld [vmem:[%s3747_s5 + $0x20] sm:$0xff] }
0x1548   :  { %2181 = vadd.xlane.f32.xlu1 %v2180_v7 }
0x1559   :  { %2495 = vperm.xlu1 %2999, %v3050_v33   ;;  %v2405_v33 = vld [vmem:[%s3747_s5 + $0x30] sm:$0xff] }
0x155a   :  { %v2980_v57 = vpack.c.bf16 %v2405_v33, %v2403_v58 }
0x15d5   :  { %v2182_v12 = vpop.xlane.xlu1 %2181 }
0x15d6   :  { %v2183_v17 = vmul.f32 0.03125, %v2182_v12  ;;  %v2392_v12 = vrot.slane %v3051_v11, %v2391_v10 }
0x15d8   :  { %v2184_v19 = vadd.f32 1e-05, %v2183_v17 }
0x15d9   :  { %v2496_v28 = vpop.permute.xlu1 %2495 }
0x15da   :  { %3044 = vrsqrt.f32 %v2184_v19 }
0x15e4   :  { %v3045_v16 = vpop.eup %3044 }
0x15e5   :  { %v2186_v20 = vmul.f32 %v3045_v16, %v2178_v4  ;;  %v2406_v4 = vld [vmem:[%s3747_s5 + $0x38] sm:$0xff] }
0x15e6   :  { %v2978_v7 = vpack.c.bf16 %v2406_v4, %v2404_v6 }
0x15e7   :  { %v2191_v22 = vmul.f32 %v2190_v15, %v2186_v20  ;;  %v2581_v15 = vld [vmem:[%s3745_s3 + $0x10] ss:$0 sm:$0xff] }
0x15e9   :  { %v2196_v23 = vadd.f32 %v2195_v21, %v2191_v22  ;;  %v2410_v21 = vrot.slane %v3051_v11, %v3452_v18  ;;  %v2414_v22 = vrot.slane %v3052_v62, %v3452_v18 }
0x15eb   :  { %2861 = vmatmul.mubr.msk.f32.vlgmr.msra.gmra.mrb[32].mxu1 %vm197_vm0, %v2196_v23 }
0x15ec   :  { %2482 = vmatprep.mubr.f32.mxu1 %v3070_v59  ;;  %v2575_v59 = vld [vmem:[%s3751_s9 + $0x58] sm:$0xff]  ;;  %s3055_s9 = scalar_lea.hbm %s3753_s11, 16 }
0x15ed   :  { %v2966_v24 = vpack.c.bf16 %v2575_v59, %v2574_v32  ;;  %v3053_v32 = vld [vmem:[%s3742_s0] sm:$0xff]  ;;  %p3056_p0 = scmp.ne.s32.totalorder %s3753_s11, %s3055_s9  ;;  %p3059_p1 = scmp.lt.u32.totalorder %s3055_s9, %s3753_s11 }
0x15ef   :  { %2967 = vmatpush3.bf16.msra.mxu0 %v2966_v24  ;;  %v3054_v24 = vld [vmem:[%s3742_s0 + $0x8] sm:$0xff]  ;;  %p3061_p2 = pnand %p3059_p1, %p3056_p0 }
0x15f0   :  { %2968 = vmatprep.subr.bf16.mxu0 %v3068_v56 }
0x15f3   :  { %2970 = vmatpush3.bf16.msra.mxu0 %v2969_v29 }
0x15f4   :  { %2971 = vmatprep.subr.bf16.mxu0 %v3068_v56 }
0x15f7   :  { %2973 = vmatpush3.bf16.msra.mxu0 %v2972_v35 }
0x16be   :  { %v2275_v60 = vpop.f32.mrb[32].mxu1 }
0x16bf   :  { %v2276_v37 = vadd.f32 %v2275_v60, %v2205_v36  ;;  %v2862_v38 = vpop.f32.mrb[33].mxu1 }
0x16c1   :  { %v2279_v39 = vmul.f32 %v2276_v37, %v2276_v37 }
0x16c3   :  { %v2280_v40 = vmul.f32 %v2279_v39, %v2276_v37 }
0x16c5   :  { %v2281_v41 = vmul.f32 0.044715, %v2280_v40 }
0x16c7   :  { %v2282_v56 = vadd.f32 %v2281_v41, %v2276_v37 }
0x16c9   :  { %v2283_v42 = vmul.f32 0.7978846, %v2282_v56 }
0x16cb   :  { %3046 = vtanh.f32 %v2283_v42 }
0x16d5   :  { %v3047_v43 = vpop.eup %3046 }
0x16d6   :  { %v2285_v44 = vadd.f32 1.0, %v3047_v43 }
0x16d8   :  { %v2286_v45 = vmul.f32 0.5, %v2285_v44 }
0x16da   :  { %v2287_v47 = vmul.f32 %v2286_v45, %v2276_v37 }
0x16dc   :  { %2880 = vmatmul.mubr.msk.f32.vlgmr.msra.gmra.mrb[14].mxu0 %vm1225_vm8, %v2287_v47 }
0x17af   :  { %v2366_v49 = vpop.f32.mrb[14].mxu0 }
0x17b0   :  { %v2370_v34 = vadd.f32 %v2366_v49, %v3624_v26  ;;  %v2881_v50 = vpop.f32.mrb[15].mxu0  ;;  %v2399_v26 = vld [vmem:[%s3747_s5] sm:$0xff] }
0x17b1   :  { %v2976_v5 = vpack.c.bf16 %v2401_v3, %v2399_v26 }
0x17b2   :  { %v2375_v51 = vadd.f32 %v2374_v48, %v2370_v34 }
0x17b3   :  { %2977 = vmatpush1.bf16.msra.mxu1 %v2976_v5 }
0x17b4   :  { %v2376_v52 = vsel %vm197_vm0, %v2375_v51, 0.0  ;;  %2979 = vmatprep.subr.bf16.mxu1 %v2978_v7 }
0x17b5   :  { %2377 = vadd.xlane.f32.xlu0 %v2376_v52 }
0x17b7   :  { %2981 = vmatpush1.bf16.msra.mxu1 %v2980_v57 }
0x1842   :  { %v2378_v53 = vpop.xlane.xlu0 %2377 }
0x1843   :  { %v2379_v54 = vmul.f32 0.03125, %v2378_v53 }
0x1845   :  { %v2380_v55 = vsub.f32 %v2375_v51, %v2379_v54 }
0x1847   :  { %v2381_v61 = vmul.f32 %v2380_v55, %v2380_v55 }
0x1849   :  { %v2382_v0 = vsel %vm197_vm0, %v2381_v61, 0.0 }
0x184a   :  { %2383 = vadd.xlane.f32.xlu0 %v2382_v0 }
0x18d7   :  { %v2384_v46 = vpop.xlane.xlu0 %2383 }
0x18d8   :  { %v2385_v8 = vmul.f32 0.03125, %v2384_v46 }
0x18da   :  { %v2386_v9 = vadd.f32 1e-05, %v2385_v8 }
0x18dc   :  { %3048 = vrsqrt.f32 %v2386_v9 }
0x18e6   :  { %v3049_v17 = vpop.eup %3048 }
0x18e7   :  { %v2388_v19 = vmul.f32 %v3049_v17, %v2380_v55 }
0x18e9   :  { %v2393_v16 = vmul.f32 %v2392_v12, %v2388_v19 }
0x18eb   :  { %v2398_v20 = vadd.f32 %v2581_v15, %v2393_v16 }
0x18ed   :  { %2582 = vmatmul.mubr.msk.f32.vlgmr.msra.gmra.mrb[34].mxu1 %vm197_vm0, %v2398_v20 }
0x19c0   :  { %v2484_v23 = vpop.f32.mrb[34].mxu1 }
0x19c1   :  { %v2485_v2 = vadd.f32 %v2484_v23, %v2410_v21  ;;  %v2486_v25 = vpop.f32.mrb[35].mxu1 }
0x19c2   :  { %v2487_v63 = vadd.f32 %v2486_v25, %v2414_v22 }
0x19c3   :  { %v2489_v59 = vsub.f32 %v2485_v2, %v3053_v32 }
0x19c4   :  { %v2490_v27 = vsub.f32 %v2487_v63, %v3054_v24 }
0x19c5   :  { %v2491_v29 = vand.u32 2147483647, %v2489_v59 }
0x19c6   :  { %v2492_v30 = vand.u32 2147483647, %v2490_v27 }
0x19c7   :  { %v2498_v31 = vmul.f32 %v2496_v28, %v2491_v29 }
0x19c8   :  { %v2499_v35 = vmul.f32 %v2496_v28, %v2492_v30 }
0x19ca   :  { %v2500_v18 = vadd.f32 %v2499_v35, %v2498_v31 }
0x19cc   :  { %2501 = vadd.xlane.f32.xlu0 %v2500_v18 }
0x1a59   :  { %v2502_v36 = vpop.xlane.xlu0 %2501 }
0x1a5a   :  { %v2503_v60 = vrot.slane %v2502_v36, 4 }
0x1a5c   :  { %v2504_v37 = vadd.f32 %v2503_v60, %v2502_v36 }
0x1a5e   :  { %v2505_v38 = vrot.slane %v2504_v37, 2 }
0x1a60   :  { %v2506_v39 = vadd.f32 %v2505_v38, %v2504_v37 }
0x1a62   :  { %v2507_v40 = vrot.slane %v2506_v39, 1 }
0x1a64   :  { %v2508_v41 = vadd.f32 %v2507_v40, %v2506_v39 }
0x1a66   :  { %2982 = vpush %v2508_v41 }
0x1a97   :  { %s2983_s3 = spop %2982 }
0x1a98   :  { %s2512_s29 = smul.f32 0.00048828125, %s2983_s3 }
0x1a9a   :  { %2514 = sst [smem:[#allocation2]] %s2512_s29 }
0x1a9b   :  { %3064 = shalt.err (!%p3061_p2)
}
0x1a9c   :  { %s3080_s14 = smov [#allocation2]  }
0x1a9d   :  { %2522 = dma.smem_to_hbm %s3080_s14, 16, %s3753_s11, [#allocation3]  }
0x1a9e   :  { %3065 = dma.done.wait [#allocation3], 16  }
0x1a9f   :  { %3066 = vsyncadd [#allocation3], 4294967280 }
0x1aa0   :  { %2526 = sfence }
0x1aa1   :  { %2527 = vsyncpa [#allocation3], 1 }

</bundles_post_ra>
